<compile_context>
chip_gen: v5e
topology: v5e:2x2
jax: 0.10.0
libtpu: 0.0.40
codegen_flags: <defaults>
</compile_context>

<pallas_src>
import functools
import math

import jax
import jax.numpy as jnp
from jax.experimental import pallas as pl
from jax.experimental.pallas import tpu as pltpu

# ----------------------- model hyper-parameters -----------------------------
IN_CH = 3
IMG = 16
PATCH = 8
NUM_PATCHES = (IMG // PATCH) * (IMG // PATCH)          # 4
SEQ = NUM_PATCHES + 1                                  # 5  (CLS + patches)
HIDDEN = 32
NUM_HEADS = 4
HEAD_DIM = HIDDEN // NUM_HEADS                         # 8
MLP_DIM = 128
NUM_LAYERS = 2
PROJ_DIM = 512                                         # CLIP image feature dim
NUM_CLASSES = 10
LN_EPS = 1e-5
FLAT = IN_CH * PATCH * PATCH                           # 192

# Packed-weight layout constants.
VEC_LANES = 128
LVEC_ROWS = 8   # rows: ln1_g, ln1_b, qkv_b, out_b, ln2_g, ln2_b, fc1_b, fc2_b
GVEC_ROWS = 8   # rows: pre_g, pre_b, post_g, post_b, head_b, pad, pad, pad
LW_QKV0 = 0                    # qkv_w  : lanes [0, 96)
LW_OUT0 = 3 * HIDDEN           # out_w  : lanes [96, 128)
LW_FC10 = 4 * HIDDEN           # fc1_w  : lanes [128, 256)
LW_COLS = 4 * HIDDEN + MLP_DIM


# --------------------------- fused Pallas kernel ----------------------------
def _clip_fused_kernel(
    patches_ref,   # [B_TILE, NUM_PATCHES, FLAT]   raw per-image patches
    patch_w_ref,   # [FLAT, HIDDEN]
    pos_ref,       # [SEQ, HIDDEN]   (row 0 already = cls_embed + pos[0])
    lw_ref,        # [L, HIDDEN, LW_COLS]   packed (qkv_w | out_w | fc1_w)
    fc2_w_ref,     # [L, MLP_DIM, HIDDEN]
    lvec_ref,      # [L, LVEC_ROWS, VEC_LANES]   packed per-layer vectors
    gvec_ref,      # [GVEC_ROWS, VEC_LANES]      packed global vectors
    proj_w_ref,    # [HIDDEN, PROJ_DIM]
    head_w_ref,    # [PROJ_DIM, NUM_CLASSES]
    logits_ref,    # [1, B_TILE, NUM_CLASSES]
    *, b_tile,
):
    f32 = jnp.float32
    T = b_tile * SEQ

    def ln(x, g, b):
        mu = jnp.mean(x, axis=-1, keepdims=True)
        var = jnp.mean((x - mu) ** 2, axis=-1, keepdims=True)
        return (x - mu) * jax.lax.rsqrt(var + LN_EPS) * g + b

    gv = gvec_ref[...]

    # --- patch embedding for the whole batch tile in one matmul -------------
    pf = patches_ref[...].reshape(b_tile * NUM_PATCHES, FLAT)
    pe = jnp.dot(pf, patch_w_ref[...], preferred_element_type=f32)
    pe = pe.reshape(b_tile, NUM_PATCHES, HIDDEN)
    # CLS token embedding (+ its positional embedding) is folded into pos row 0,
    # so the CLS row of `tok` is just zeros here.
    tok = jnp.concatenate([jnp.zeros((b_tile, 1, HIDDEN), f32), pe], axis=1)
    tok = tok + pos_ref[...][None, :, :]                     # [BT, SEQ, H]
    x = ln(tok.reshape(T, HIDDEN), gv[0:1, :HIDDEN], gv[1:2, :HIDDEN])

    # Block-diagonal attention mask keeps images independent when b_tile > 1
    # (for b_tile == 1 no mask is needed at all).
    if b_tile > 1:
        r = jax.lax.broadcasted_iota(jnp.int32, (T, T), 0)
        c = jax.lax.broadcasted_iota(jnp.int32, (T, T), 1)
        same_img = (r // SEQ) == (c // SEQ)
    else:
        same_img = None

    scale = 1.0 / math.sqrt(HEAD_DIM)
    for l in range(NUM_LAYERS):
        lv = lvec_ref[l]                         # [8, 128]
        wl = lw_ref[l]                           # [HIDDEN, LW_COLS]

        # ------------------------- self-attention block ----------------------
        res = x
        xh = ln(x, lv[0:1, :HIDDEN], lv[1:2, :HIDDEN])
        qkv = (jnp.dot(xh, wl[:, LW_QKV0:LW_QKV0 + 3 * HIDDEN],
                       preferred_element_type=f32)
               + lv[2:3, :3 * HIDDEN])                               # [T, 3H]
        o_parts = []
        for hd in range(NUM_HEADS):
            c0 = hd * HEAD_DIM
            q = qkv[:, c0:c0 + HEAD_DIM]                             # [T, Dh]
            k = qkv[:, HIDDEN + c0:HIDDEN + c0 + HEAD_DIM]           # [T, Dh]
            v = qkv[:, 2 * HIDDEN + c0:2 * HIDDEN + c0 + HEAD_DIM]   # [T, Dh]
            s = jax.lax.dot_general(
                q, k, (((1,), (1,)), ((), ())),
                preferred_element_type=f32) * scale                 # [T, T]
            if same_img is not None:
                s = jnp.where(same_img, s, jnp.float32(-1e30))
            m = jnp.max(s, axis=-1, keepdims=True)
            p = jnp.exp(s - m)
            p = p * pl.reciprocal(jnp.sum(p, axis=-1, keepdims=True), approx=True)
            o_parts.append(jnp.dot(p, v, preferred_element_type=f32))
        o_all = jnp.concatenate(o_parts, axis=-1)                    # [T, H]
        attn = (jnp.dot(o_all, wl[:, LW_OUT0:LW_OUT0 + HIDDEN],
                        preferred_element_type=f32)
                + lv[3:4, :HIDDEN])
        x = res + attn

        # ------------------------- MLP block (quick_gelu) --------------------
        res = x
        xh = ln(x, lv[4:5, :HIDDEN], lv[5:6, :HIDDEN])
        xh = (jnp.dot(xh, wl[:, LW_FC10:LW_FC10 + MLP_DIM],
                      preferred_element_type=f32)
              + lv[6:7, :MLP_DIM])
        xh = xh * jax.nn.sigmoid(1.702 * xh)                         # quick_gelu
        xh = (jnp.dot(xh, fc2_w_ref[l], preferred_element_type=f32)
              + lv[7:8, :HIDDEN])
        x = res + xh

    # --- pooled CLS token -> post-LN -> visual projection (no bias) ----------
    cls = x.reshape(b_tile, SEQ, HIDDEN)[:, 0:1, :].reshape(b_tile, HIDDEN)
    pooled = ln(cls, gv[2:3, :HIDDEN], gv[3:4, :HIDDEN])             # [BT, H]
    feats = jnp.dot(pooled, proj_w_ref[...], preferred_element_type=f32)  # [BT, 512]

    # --- module forward: L2-normalize + classification head ------------------
    inv = jax.lax.rsqrt(jnp.sum(feats * feats, axis=-1, keepdims=True) + 1e-12)
    feats = feats * inv
    logits_ref[0] = (
        jnp.dot(feats, head_w_ref[...], preferred_element_type=f32)
        + gv[4:5, :NUM_CLASSES])


# ------------------------------ parameters ----------------------------------
def init_params(key):
    def nrm(k, shape, scale=0.02):
        return scale * jax.random.normal(k, shape, dtype=jnp.float32)

    keys = iter(jax.random.split(key, 8 + NUM_LAYERS * 8))
    ones = lambda n: jnp.ones((n,), jnp.float32)
    zeros = lambda n: jnp.zeros((n,), jnp.float32)

    params = {
        "patch_w": nrm(next(keys), (FLAT, HIDDEN)),            # conv-as-matmul, no bias
        "cls": nrm(next(keys), (1, 1, HIDDEN)),
        "pos": nrm(next(keys), (SEQ, HIDDEN)),
        "pre_ln_g": ones(HIDDEN), "pre_ln_b": zeros(HIDDEN),
        "post_ln_g": ones(HIDDEN), "post_ln_b": zeros(HIDDEN),
        "proj_w": nrm(next(keys), (HIDDEN, PROJ_DIM)),         # visual projection, no bias
        "head_w": nrm(next(keys), (PROJ_DIM, NUM_CLASSES)),    # Linear(512, num_classes)
        "head_b": zeros(NUM_CLASSES),
        "layers": [],
    }
    for _ in range(NUM_LAYERS):
        params["layers"].append({
            "ln1_g": ones(HIDDEN), "ln1_b": zeros(HIDDEN),
            "qkv_w": nrm(next(keys), (HIDDEN, 3 * HIDDEN)),
            "qkv_b": zeros(3 * HIDDEN),
            "out_w": nrm(next(keys), (HIDDEN, HIDDEN)),
            "out_b": zeros(HIDDEN),
            "ln2_g": ones(HIDDEN), "ln2_b": zeros(HIDDEN),
            "fc1_w": nrm(next(keys), (HIDDEN, MLP_DIM)),
            "fc1_b": zeros(MLP_DIM),
            "fc2_w": nrm(next(keys), (MLP_DIM, HIDDEN)),
            "fc2_b": zeros(HIDDEN),
        })
    return params


# ------------------------- weight packing (host side) ------------------------
def _pack_weights(params):
    f32 = jnp.float32

    def row(v):
        v = jnp.asarray(v, f32).reshape(-1)
        return jnp.pad(v, (0, VEC_LANES - v.shape[0]))

    # Fold CLS embedding into pos row 0 (cls_embed + pos[0] is input-independent).
    pos_aug = jnp.concatenate(
        [params["pos"][0:1] + params["cls"].reshape(1, HIDDEN), params["pos"][1:]],
        axis=0)                                                    # [SEQ, HIDDEN]

    lw = jnp.stack([
        jnp.concatenate([lyr["qkv_w"], lyr["out_w"], lyr["fc1_w"]], axis=-1)
        for lyr in params["layers"]], axis=0)                      # [L, 32, 256]
    fc2_w = jnp.stack([lyr["fc2_w"] for lyr in params["layers"]], axis=0)

    lvec = jnp.stack([
        jnp.stack([row(lyr["ln1_g"]), row(lyr["ln1_b"]), row(lyr["qkv_b"]),
                   row(lyr["out_b"]), row(lyr["ln2_g"]), row(lyr["ln2_b"]),
                   row(lyr["fc1_b"]), row(lyr["fc2_b"])], axis=0)
        for lyr in params["layers"]], axis=0)                      # [L, 8, 128]

    gvec = jnp.stack(
        [row(params["pre_ln_g"]), row(params["pre_ln_b"]),
         row(params["post_ln_g"]), row(params["post_ln_b"]),
         row(params["head_b"])]
        + [jnp.zeros((VEC_LANES,), f32)] * (GVEC_ROWS - 5), axis=0)  # [8, 128]

    return [params["patch_w"], pos_aug, lw, fc2_w, lvec, gvec,
            params["proj_w"], params["head_w"]]


# ------------------------------- forward ------------------------------------
def clip_image_classifier_forward(params, images, b_tile=None):
    """images: NCHW float32 [B, C, H, W]  ->  logits [B, NUM_CLASSES]."""
    B, C, H, W = images.shape

    # ---- patch extraction (pure layout glue, XLA; no concats) ---------------
    x = images.reshape(B, C, H // PATCH, PATCH, W // PATCH, PATCH)
    patches = x.transpose(0, 2, 4, 1, 3, 5).reshape(B, NUM_PATCHES, FLAT)

    # B_TILE: keep >= 2 grid steps so both v7x TensorCores get work.  On
    # single-TC chips (v5e/v6e) pass b_tile=B to collapse to one grid step.
    if b_tile is None:
        b_tile = (B + 1) // 2 if B > 1 else 1
    num_steps = -(-B // b_tile)
    b_pad = num_steps * b_tile
    if b_pad != B:
        patches = jnp.concatenate(
            [patches, jnp.zeros((b_pad - B, NUM_PATCHES, FLAT), patches.dtype)],
            axis=0)

    weight_args = _pack_weights(params)
    # Full-array blocks with a constant block index -> weights stay VMEM
    # resident and are only DMA'd once across the batch grid.
    weight_specs = [
        pl.BlockSpec(w.shape, lambda i, nd=w.ndim: (0,) * nd) for w in weight_args
    ]

    # Advisory cost estimate so XLA schedules the surrounding glue sensibly.
    flops_img = (2 * NUM_PATCHES * FLAT * HIDDEN
                 + NUM_LAYERS * (2 * SEQ * HIDDEN * 3 * HIDDEN
                                 + NUM_HEADS * 4 * SEQ * SEQ * HEAD_DIM
                                 + 2 * SEQ * HIDDEN * HIDDEN
                                 + 4 * SEQ * HIDDEN * MLP_DIM)
                 + 2 * HIDDEN * PROJ_DIM + 2 * PROJ_DIM * NUM_CLASSES)
    transc_img = NUM_LAYERS * (NUM_HEADS * SEQ * SEQ + SEQ * MLP_DIM)
    bytes_acc = (sum(int(w.size) * 4 for w in weight_args)
                 + int(patches.size) * 4 + int(b_pad * NUM_CLASSES * 4))

    out = pl.pallas_call(
        functools.partial(_clip_fused_kernel, b_tile=b_tile),
        out_shape=jax.ShapeDtypeStruct((num_steps, b_tile, NUM_CLASSES), jnp.float32),
        grid=(num_steps,),
        in_specs=[pl.BlockSpec((b_tile, NUM_PATCHES, FLAT), lambda i: (i, 0, 0))]
                 + weight_specs,
        out_specs=pl.BlockSpec((1, b_tile, NUM_CLASSES), lambda i: (i, 0, 0)),
        compiler_params=pltpu.CompilerParams(
            dimension_semantics=("parallel",)),
        cost_estimate=pl.CostEstimate(
            flops=int(b_pad * flops_img),
            transcendentals=int(b_pad * transc_img),
            bytes_accessed=bytes_acc),
    )(patches, *weight_args)

    return out.reshape(b_pad, NUM_CLASSES)[:B]


# -------------------------------- main ---------------------------------------
if __name__ == "__main__":
    key = jax.random.PRNGKey(0)
    pkey, xkey = jax.random.split(key)
    params = init_params(pkey)
    images = jax.random.normal(xkey, (2, IN_CH, IMG, IMG), dtype=jnp.float32)

    fwd = jax.jit(clip_image_classifier_forward)
    logits = fwd(params, images)
    jax.block_until_ready(logits)

    assert logits.shape == (2, NUM_CLASSES), logits.shape
    assert logits.dtype == jnp.float32
    assert bool(jnp.all(jnp.isfinite(logits)))
    print("KERNEL_OK")
</pallas_src>

<mosaic_0001>
module attributes {stable_mosaic.version = 11 : i64} {
  func.func @_clip_fused_kernel(%arg0: i32, %arg1: memref<1x4x192xf32, #tpu.memory_space<vmem>>, %arg2: memref<192x32xf32, #tpu.memory_space<vmem>>, %arg3: memref<5x32xf32, #tpu.memory_space<vmem>>, %arg4: memref<2x32x256xf32, #tpu.memory_space<vmem>>, %arg5: memref<2x128x32xf32, #tpu.memory_space<vmem>>, %arg6: memref<2x8x128xf32, #tpu.memory_space<vmem>>, %arg7: memref<8x128xf32, #tpu.memory_space<vmem>>, %arg8: memref<32x512xf32, #tpu.memory_space<vmem>>, %arg9: memref<512x10xf32, #tpu.memory_space<vmem>>, %arg10: memref<1x1x10xf32, #tpu.memory_space<vmem>>) attributes {dimension_semantics = [#tpu.dimension_semantics<parallel>], iteration_bounds = array<i64: 2>, scalar_prefetch = 0 : i64, scratch_operands = 0 : i64, tpu.core_type = #tpu.core_type<tc>, window_params = [{transform_indices = @transform_0, window_bounds = array<i64: 1, 4, 192>}, {pipeline_mode = #tpu.pipeline_mode<synchronous>, transform_indices = @transform_1, window_bounds = array<i64: 192, 32>}, {pipeline_mode = #tpu.pipeline_mode<synchronous>, transform_indices = @transform_2, window_bounds = array<i64: 5, 32>}, {pipeline_mode = #tpu.pipeline_mode<synchronous>, transform_indices = @transform_3, window_bounds = array<i64: 2, 32, 256>}, {pipeline_mode = #tpu.pipeline_mode<synchronous>, transform_indices = @transform_4, window_bounds = array<i64: 2, 128, 32>}, {pipeline_mode = #tpu.pipeline_mode<synchronous>, transform_indices = @transform_5, window_bounds = array<i64: 2, 8, 128>}, {pipeline_mode = #tpu.pipeline_mode<synchronous>, transform_indices = @transform_6, window_bounds = array<i64: 8, 128>}, {pipeline_mode = #tpu.pipeline_mode<synchronous>, transform_indices = @transform_7, window_bounds = array<i64: 32, 512>}, {pipeline_mode = #tpu.pipeline_mode<synchronous>, transform_indices = @transform_8, window_bounds = array<i64: 512, 10>}, {transform_indices = @transform_9, window_bounds = array<i64: 1, 1, 10>}]} {
    %c0 = arith.constant 0 : index
    %c0_0 = arith.constant 0 : index
    %0 = vector.load %arg7[%c0, %c0_0] : memref<8x128xf32, #tpu.memory_space<vmem>>, vector<8x128xf32>
    %c0_1 = arith.constant 0 : index
    %c0_2 = arith.constant 0 : index
    %c0_3 = arith.constant 0 : index
    %1 = vector.load %arg1[%c0_1, %c0_2, %c0_3] : memref<1x4x192xf32, #tpu.memory_space<vmem>>, vector<1x4x192xf32>
    %2 = vector.shape_cast %1 : vector<1x4x192xf32> to vector<4x192xf32>
    %c0_4 = arith.constant 0 : index
    %c0_5 = arith.constant 0 : index
    %3 = vector.load %arg2[%c0_4, %c0_5] : memref<192x32xf32, #tpu.memory_space<vmem>>, vector<192x32xf32>
    %cst = arith.constant dense<0.000000e+00> : vector<4x32xf32>
    %4 = tpu.matmul %2, %3, %cst {dimension_numbers = #tpu.dot_dimension_numbers<[1], [0], [0], [1], [0, 0, 1, 1], [], []>} : vector<4x192xf32>, vector<192x32xf32>, vector<4x32xf32> -> vector<4x32xf32>
    %5 = vector.shape_cast %4 : vector<4x32xf32> to vector<1x4x32xf32>
    %cst_6 = arith.constant 0.000000e+00 : f32
    %6 = vector.broadcast %cst_6 : f32 to vector<1x1x32xf32>
    %7 = tpu.concatenate %6, %5 in 1 : vector<1x1x32xf32>, vector<1x4x32xf32> -> vector<1x5x32xf32>
    %c0_7 = arith.constant 0 : index
    %c0_8 = arith.constant 0 : index
    %8 = vector.load %arg3[%c0_7, %c0_8] : memref<5x32xf32, #tpu.memory_space<vmem>>, vector<5x32xf32>
    %9 = vector.shape_cast %8 : vector<5x32xf32> to vector<1x5x32xf32>
    %10 = arith.addf %7, %9 : vector<1x5x32xf32>
    %11 = vector.shape_cast %10 : vector<1x5x32xf32> to vector<5x32xf32>
    %12 = vector.extract_strided_slice %0 {offsets = [0, 0], sizes = [1, 32], strides = [1, 1]} : vector<8x128xf32> to vector<1x32xf32>
    %13 = vector.extract_strided_slice %0 {offsets = [1, 0], sizes = [1, 32], strides = [1, 1]} : vector<8x128xf32> to vector<1x32xf32>
    %cst_9 = arith.constant dense<0.000000e+00> : vector<5xf32>
    %14 = vector.multi_reduction <add>, %11, %cst_9 [1] : vector<5x32xf32> to vector<5xf32>
    %15 = vector.shape_cast %14 : vector<5xf32> to vector<5x1xf32>
    %cst_10 = arith.constant 3.200000e+01 : f32
    %16 = vector.broadcast %cst_10 : f32 to vector<5x1xf32>
    %17 = arith.divf %15, %16 : vector<5x1xf32>
    %18 = vector.broadcast %17 : vector<5x1xf32> to vector<5x32xf32>
    %19 = arith.subf %11, %18 : vector<5x32xf32>
    %20 = arith.mulf %19, %19 : vector<5x32xf32>
    %cst_11 = arith.constant dense<0.000000e+00> : vector<5xf32>
    %21 = vector.multi_reduction <add>, %20, %cst_11 [1] : vector<5x32xf32> to vector<5xf32>
    %22 = vector.shape_cast %21 : vector<5xf32> to vector<5x1xf32>
    %cst_12 = arith.constant 3.200000e+01 : f32
    %23 = vector.broadcast %cst_12 : f32 to vector<5x1xf32>
    %24 = arith.divf %22, %23 : vector<5x1xf32>
    %25 = vector.broadcast %17 : vector<5x1xf32> to vector<5x32xf32>
    %26 = arith.subf %11, %25 : vector<5x32xf32>
    %cst_13 = arith.constant 9.99999974E-6 : f32
    %27 = vector.broadcast %cst_13 : f32 to vector<5x1xf32>
    %28 = arith.addf %24, %27 : vector<5x1xf32>
    %29 = math.rsqrt %28 : vector<5x1xf32>
    %30 = vector.broadcast %29 : vector<5x1xf32> to vector<5x32xf32>
    %31 = arith.mulf %26, %30 : vector<5x32xf32>
    %32 = vector.broadcast %12 : vector<1x32xf32> to vector<5x32xf32>
    %33 = arith.mulf %31, %32 : vector<5x32xf32>
    %34 = vector.broadcast %13 : vector<1x32xf32> to vector<5x32xf32>
    %35 = arith.addf %33, %34 : vector<5x32xf32>
    %c0_14 = arith.constant 0 : index
    %c0_15 = arith.constant 0 : index
    %c0_16 = arith.constant 0 : index
    %36 = vector.load %arg6[%c0_14, %c0_15, %c0_16] : memref<2x8x128xf32, #tpu.memory_space<vmem>>, vector<1x8x128xf32>
    %37 = vector.shape_cast %36 : vector<1x8x128xf32> to vector<8x128xf32>
    %c0_17 = arith.constant 0 : index
    %c0_18 = arith.constant 0 : index
    %c0_19 = arith.constant 0 : index
    %38 = vector.load %arg4[%c0_17, %c0_18, %c0_19] : memref<2x32x256xf32, #tpu.memory_space<vmem>>, vector<1x32x256xf32>
    %39 = vector.shape_cast %38 : vector<1x32x256xf32> to vector<32x256xf32>
    %40 = vector.extract_strided_slice %37 {offsets = [0, 0], sizes = [1, 32], strides = [1, 1]} : vector<8x128xf32> to vector<1x32xf32>
    %41 = vector.extract_strided_slice %37 {offsets = [1, 0], sizes = [1, 32], strides = [1, 1]} : vector<8x128xf32> to vector<1x32xf32>
    %cst_20 = arith.constant dense<0.000000e+00> : vector<5xf32>
    %42 = vector.multi_reduction <add>, %35, %cst_20 [1] : vector<5x32xf32> to vector<5xf32>
    %43 = vector.shape_cast %42 : vector<5xf32> to vector<5x1xf32>
    %cst_21 = arith.constant 3.200000e+01 : f32
    %44 = vector.broadcast %cst_21 : f32 to vector<5x1xf32>
    %45 = arith.divf %43, %44 : vector<5x1xf32>
    %46 = vector.broadcast %45 : vector<5x1xf32> to vector<5x32xf32>
    %47 = arith.subf %35, %46 : vector<5x32xf32>
    %48 = arith.mulf %47, %47 : vector<5x32xf32>
    %cst_22 = arith.constant dense<0.000000e+00> : vector<5xf32>
    %49 = vector.multi_reduction <add>, %48, %cst_22 [1] : vector<5x32xf32> to vector<5xf32>
    %50 = vector.shape_cast %49 : vector<5xf32> to vector<5x1xf32>
    %cst_23 = arith.constant 3.200000e+01 : f32
    %51 = vector.broadcast %cst_23 : f32 to vector<5x1xf32>
    %52 = arith.divf %50, %51 : vector<5x1xf32>
    %53 = vector.broadcast %45 : vector<5x1xf32> to vector<5x32xf32>
    %54 = arith.subf %35, %53 : vector<5x32xf32>
    %cst_24 = arith.constant 9.99999974E-6 : f32
    %55 = vector.broadcast %cst_24 : f32 to vector<5x1xf32>
    %56 = arith.addf %52, %55 : vector<5x1xf32>
    %57 = math.rsqrt %56 : vector<5x1xf32>
    %58 = vector.broadcast %57 : vector<5x1xf32> to vector<5x32xf32>
    %59 = arith.mulf %54, %58 : vector<5x32xf32>
    %60 = vector.broadcast %40 : vector<1x32xf32> to vector<5x32xf32>
    %61 = arith.mulf %59, %60 : vector<5x32xf32>
    %62 = vector.broadcast %41 : vector<1x32xf32> to vector<5x32xf32>
    %63 = arith.addf %61, %62 : vector<5x32xf32>
    %64 = vector.extract_strided_slice %39 {offsets = [0, 0], sizes = [32, 96], strides = [1, 1]} : vector<32x256xf32> to vector<32x96xf32>
    %cst_25 = arith.constant dense<0.000000e+00> : vector<5x96xf32>
    %65 = tpu.matmul %63, %64, %cst_25 {dimension_numbers = #tpu.dot_dimension_numbers<[1], [0], [0], [1], [0, 0, 1, 1], [], []>} : vector<5x32xf32>, vector<32x96xf32>, vector<5x96xf32> -> vector<5x96xf32>
    %66 = vector.extract_strided_slice %37 {offsets = [2, 0], sizes = [1, 96], strides = [1, 1]} : vector<8x128xf32> to vector<1x96xf32>
    %67 = vector.broadcast %66 : vector<1x96xf32> to vector<5x96xf32>
    %68 = arith.addf %65, %67 : vector<5x96xf32>
    %69 = vector.extract_strided_slice %68 {offsets = [0, 0], sizes = [5, 8], strides = [1, 1]} : vector<5x96xf32> to vector<5x8xf32>
    %70 = vector.extract_strided_slice %68 {offsets = [0, 32], sizes = [5, 8], strides = [1, 1]} : vector<5x96xf32> to vector<5x8xf32>
    %71 = vector.extract_strided_slice %68 {offsets = [0, 64], sizes = [5, 8], strides = [1, 1]} : vector<5x96xf32> to vector<5x8xf32>
    %cst_26 = arith.constant dense<0.000000e+00> : vector<5x5xf32>
    %72 = tpu.matmul %69, %70, %cst_26 {dimension_numbers = #tpu.dot_dimension_numbers<[1], [1], [0], [0], [0, 0, 1, 0], [], []>} : vector<5x8xf32>, vector<5x8xf32>, vector<5x5xf32> -> vector<5x5xf32>
    %cst_27 = arith.constant 0.353553385 : f32
    %73 = vector.broadcast %cst_27 : f32 to vector<5x5xf32>
    %74 = arith.mulf %72, %73 : vector<5x5xf32>
    %cst_28 = arith.constant dense<0xFF800000> : vector<5xf32>
    %75 = vector.multi_reduction <maximumf>, %74, %cst_28 [1] : vector<5x5xf32> to vector<5xf32>
    %76 = vector.shape_cast %75 : vector<5xf32> to vector<5x1xf32>
    %77 = vector.broadcast %76 : vector<5x1xf32> to vector<5x5xf32>
    %78 = arith.subf %74, %77 : vector<5x5xf32>
    %79 = math.exp %78 : vector<5x5xf32>
    %cst_29 = arith.constant dense<0.000000e+00> : vector<5xf32>
    %80 = vector.multi_reduction <add>, %79, %cst_29 [1] : vector<5x5xf32> to vector<5xf32>
    %81 = vector.shape_cast %80 : vector<5xf32> to vector<5x1xf32>
    %82 = tpu.reciprocal %81 {approx = true} : vector<5x1xf32> -> vector<5x1xf32>
    %83 = vector.broadcast %82 : vector<5x1xf32> to vector<5x5xf32>
    %84 = arith.mulf %79, %83 : vector<5x5xf32>
    %cst_30 = arith.constant dense<0.000000e+00> : vector<5x8xf32>
    %85 = tpu.matmul %84, %71, %cst_30 {dimension_numbers = #tpu.dot_dimension_numbers<[1], [0], [0], [1], [0, 0, 1, 1], [], []>} : vector<5x5xf32>, vector<5x8xf32>, vector<5x8xf32> -> vector<5x8xf32>
    %86 = vector.extract_strided_slice %68 {offsets = [0, 8], sizes = [5, 8], strides = [1, 1]} : vector<5x96xf32> to vector<5x8xf32>
    %87 = vector.extract_strided_slice %68 {offsets = [0, 40], sizes = [5, 8], strides = [1, 1]} : vector<5x96xf32> to vector<5x8xf32>
    %88 = vector.extract_strided_slice %68 {offsets = [0, 72], sizes = [5, 8], strides = [1, 1]} : vector<5x96xf32> to vector<5x8xf32>
    %cst_31 = arith.constant dense<0.000000e+00> : vector<5x5xf32>
    %89 = tpu.matmul %86, %87, %cst_31 {dimension_numbers = #tpu.dot_dimension_numbers<[1], [1], [0], [0], [0, 0, 1, 0], [], []>} : vector<5x8xf32>, vector<5x8xf32>, vector<5x5xf32> -> vector<5x5xf32>
    %cst_32 = arith.constant 0.353553385 : f32
    %90 = vector.broadcast %cst_32 : f32 to vector<5x5xf32>
    %91 = arith.mulf %89, %90 : vector<5x5xf32>
    %cst_33 = arith.constant dense<0xFF800000> : vector<5xf32>
    %92 = vector.multi_reduction <maximumf>, %91, %cst_33 [1] : vector<5x5xf32> to vector<5xf32>
    %93 = vector.shape_cast %92 : vector<5xf32> to vector<5x1xf32>
    %94 = vector.broadcast %93 : vector<5x1xf32> to vector<5x5xf32>
    %95 = arith.subf %91, %94 : vector<5x5xf32>
    %96 = math.exp %95 : vector<5x5xf32>
    %cst_34 = arith.constant dense<0.000000e+00> : vector<5xf32>
    %97 = vector.multi_reduction <add>, %96, %cst_34 [1] : vector<5x5xf32> to vector<5xf32>
    %98 = vector.shape_cast %97 : vector<5xf32> to vector<5x1xf32>
    %99 = tpu.reciprocal %98 {approx = true} : vector<5x1xf32> -> vector<5x1xf32>
    %100 = vector.broadcast %99 : vector<5x1xf32> to vector<5x5xf32>
    %101 = arith.mulf %96, %100 : vector<5x5xf32>
    %cst_35 = arith.constant dense<0.000000e+00> : vector<5x8xf32>
    %102 = tpu.matmul %101, %88, %cst_35 {dimension_numbers = #tpu.dot_dimension_numbers<[1], [0], [0], [1], [0, 0, 1, 1], [], []>} : vector<5x5xf32>, vector<5x8xf32>, vector<5x8xf32> -> vector<5x8xf32>
    %103 = vector.extract_strided_slice %68 {offsets = [0, 16], sizes = [5, 8], strides = [1, 1]} : vector<5x96xf32> to vector<5x8xf32>
    %104 = vector.extract_strided_slice %68 {offsets = [0, 48], sizes = [5, 8], strides = [1, 1]} : vector<5x96xf32> to vector<5x8xf32>
    %105 = vector.extract_strided_slice %68 {offsets = [0, 80], sizes = [5, 8], strides = [1, 1]} : vector<5x96xf32> to vector<5x8xf32>
    %cst_36 = arith.constant dense<0.000000e+00> : vector<5x5xf32>
    %106 = tpu.matmul %103, %104, %cst_36 {dimension_numbers = #tpu.dot_dimension_numbers<[1], [1], [0], [0], [0, 0, 1, 0], [], []>} : vector<5x8xf32>, vector<5x8xf32>, vector<5x5xf32> -> vector<5x5xf32>
    %cst_37 = arith.constant 0.353553385 : f32
    %107 = vector.broadcast %cst_37 : f32 to vector<5x5xf32>
    %108 = arith.mulf %106, %107 : vector<5x5xf32>
    %cst_38 = arith.constant dense<0xFF800000> : vector<5xf32>
    %109 = vector.multi_reduction <maximumf>, %108, %cst_38 [1] : vector<5x5xf32> to vector<5xf32>
    %110 = vector.shape_cast %109 : vector<5xf32> to vector<5x1xf32>
    %111 = vector.broadcast %110 : vector<5x1xf32> to vector<5x5xf32>
    %112 = arith.subf %108, %111 : vector<5x5xf32>
    %113 = math.exp %112 : vector<5x5xf32>
    %cst_39 = arith.constant dense<0.000000e+00> : vector<5xf32>
    %114 = vector.multi_reduction <add>, %113, %cst_39 [1] : vector<5x5xf32> to vector<5xf32>
    %115 = vector.shape_cast %114 : vector<5xf32> to vector<5x1xf32>
    %116 = tpu.reciprocal %115 {approx = true} : vector<5x1xf32> -> vector<5x1xf32>
    %117 = vector.broadcast %116 : vector<5x1xf32> to vector<5x5xf32>
    %118 = arith.mulf %113, %117 : vector<5x5xf32>
    %cst_40 = arith.constant dense<0.000000e+00> : vector<5x8xf32>
    %119 = tpu.matmul %118, %105, %cst_40 {dimension_numbers = #tpu.dot_dimension_numbers<[1], [0], [0], [1], [0, 0, 1, 1], [], []>} : vector<5x5xf32>, vector<5x8xf32>, vector<5x8xf32> -> vector<5x8xf32>
    %120 = vector.extract_strided_slice %68 {offsets = [0, 24], sizes = [5, 8], strides = [1, 1]} : vector<5x96xf32> to vector<5x8xf32>
    %121 = vector.extract_strided_slice %68 {offsets = [0, 56], sizes = [5, 8], strides = [1, 1]} : vector<5x96xf32> to vector<5x8xf32>
    %122 = vector.extract_strided_slice %68 {offsets = [0, 88], sizes = [5, 8], strides = [1, 1]} : vector<5x96xf32> to vector<5x8xf32>
    %cst_41 = arith.constant dense<0.000000e+00> : vector<5x5xf32>
    %123 = tpu.matmul %120, %121, %cst_41 {dimension_numbers = #tpu.dot_dimension_numbers<[1], [1], [0], [0], [0, 0, 1, 0], [], []>} : vector<5x8xf32>, vector<5x8xf32>, vector<5x5xf32> -> vector<5x5xf32>
    %cst_42 = arith.constant 0.353553385 : f32
    %124 = vector.broadcast %cst_42 : f32 to vector<5x5xf32>
    %125 = arith.mulf %123, %124 : vector<5x5xf32>
    %cst_43 = arith.constant dense<0xFF800000> : vector<5xf32>
    %126 = vector.multi_reduction <maximumf>, %125, %cst_43 [1] : vector<5x5xf32> to vector<5xf32>
    %127 = vector.shape_cast %126 : vector<5xf32> to vector<5x1xf32>
    %128 = vector.broadcast %127 : vector<5x1xf32> to vector<5x5xf32>
    %129 = arith.subf %125, %128 : vector<5x5xf32>
    %130 = math.exp %129 : vector<5x5xf32>
    %cst_44 = arith.constant dense<0.000000e+00> : vector<5xf32>
    %131 = vector.multi_reduction <add>, %130, %cst_44 [1] : vector<5x5xf32> to vector<5xf32>
    %132 = vector.shape_cast %131 : vector<5xf32> to vector<5x1xf32>
    %133 = tpu.reciprocal %132 {approx = true} : vector<5x1xf32> -> vector<5x1xf32>
    %134 = vector.broadcast %133 : vector<5x1xf32> to vector<5x5xf32>
    %135 = arith.mulf %130, %134 : vector<5x5xf32>
    %cst_45 = arith.constant dense<0.000000e+00> : vector<5x8xf32>
    %136 = tpu.matmul %135, %122, %cst_45 {dimension_numbers = #tpu.dot_dimension_numbers<[1], [0], [0], [1], [0, 0, 1, 1], [], []>} : vector<5x5xf32>, vector<5x8xf32>, vector<5x8xf32> -> vector<5x8xf32>
    %137 = tpu.concatenate %85, %102, %119, %136 in 1 : vector<5x8xf32>, vector<5x8xf32>, vector<5x8xf32>, vector<5x8xf32> -> vector<5x32xf32>
    %138 = vector.extract_strided_slice %39 {offsets = [0, 96], sizes = [32, 32], strides = [1, 1]} : vector<32x256xf32> to vector<32x32xf32>
    %cst_46 = arith.constant dense<0.000000e+00> : vector<5x32xf32>
    %139 = tpu.matmul %137, %138, %cst_46 {dimension_numbers = #tpu.dot_dimension_numbers<[1], [0], [0], [1], [0, 0, 1, 1], [], []>} : vector<5x32xf32>, vector<32x32xf32>, vector<5x32xf32> -> vector<5x32xf32>
    %140 = vector.extract_strided_slice %37 {offsets = [3, 0], sizes = [1, 32], strides = [1, 1]} : vector<8x128xf32> to vector<1x32xf32>
    %141 = vector.broadcast %140 : vector<1x32xf32> to vector<5x32xf32>
    %142 = arith.addf %139, %141 : vector<5x32xf32>
    %143 = arith.addf %35, %142 : vector<5x32xf32>
    %144 = vector.extract_strided_slice %37 {offsets = [4, 0], sizes = [1, 32], strides = [1, 1]} : vector<8x128xf32> to vector<1x32xf32>
    %145 = vector.extract_strided_slice %37 {offsets = [5, 0], sizes = [1, 32], strides = [1, 1]} : vector<8x128xf32> to vector<1x32xf32>
    %cst_47 = arith.constant dense<0.000000e+00> : vector<5xf32>
    %146 = vector.multi_reduction <add>, %143, %cst_47 [1] : vector<5x32xf32> to vector<5xf32>
    %147 = vector.shape_cast %146 : vector<5xf32> to vector<5x1xf32>
    %cst_48 = arith.constant 3.200000e+01 : f32
    %148 = vector.broadcast %cst_48 : f32 to vector<5x1xf32>
    %149 = arith.divf %147, %148 : vector<5x1xf32>
    %150 = vector.broadcast %149 : vector<5x1xf32> to vector<5x32xf32>
    %151 = arith.subf %143, %150 : vector<5x32xf32>
    %152 = arith.mulf %151, %151 : vector<5x32xf32>
    %cst_49 = arith.constant dense<0.000000e+00> : vector<5xf32>
    %153 = vector.multi_reduction <add>, %152, %cst_49 [1] : vector<5x32xf32> to vector<5xf32>
    %154 = vector.shape_cast %153 : vector<5xf32> to vector<5x1xf32>
    %cst_50 = arith.constant 3.200000e+01 : f32
    %155 = vector.broadcast %cst_50 : f32 to vector<5x1xf32>
    %156 = arith.divf %154, %155 : vector<5x1xf32>
    %157 = vector.broadcast %149 : vector<5x1xf32> to vector<5x32xf32>
    %158 = arith.subf %143, %157 : vector<5x32xf32>
    %cst_51 = arith.constant 9.99999974E-6 : f32
    %159 = vector.broadcast %cst_51 : f32 to vector<5x1xf32>
    %160 = arith.addf %156, %159 : vector<5x1xf32>
    %161 = math.rsqrt %160 : vector<5x1xf32>
    %162 = vector.broadcast %161 : vector<5x1xf32> to vector<5x32xf32>
    %163 = arith.mulf %158, %162 : vector<5x32xf32>
    %164 = vector.broadcast %144 : vector<1x32xf32> to vector<5x32xf32>
    %165 = arith.mulf %163, %164 : vector<5x32xf32>
    %166 = vector.broadcast %145 : vector<1x32xf32> to vector<5x32xf32>
    %167 = arith.addf %165, %166 : vector<5x32xf32>
    %168 = vector.extract_strided_slice %39 {offsets = [0, 128], sizes = [32, 128], strides = [1, 1]} : vector<32x256xf32> to vector<32x128xf32>
    %cst_52 = arith.constant dense<0.000000e+00> : vector<5x128xf32>
    %169 = tpu.matmul %167, %168, %cst_52 {dimension_numbers = #tpu.dot_dimension_numbers<[1], [0], [0], [1], [0, 0, 1, 1], [], []>} : vector<5x32xf32>, vector<32x128xf32>, vector<5x128xf32> -> vector<5x128xf32>
    %170 = vector.extract_strided_slice %37 {offsets = [6, 0], sizes = [1, 128], strides = [1, 1]} : vector<8x128xf32> to vector<1x128xf32>
    %171 = vector.broadcast %170 : vector<1x128xf32> to vector<5x128xf32>
    %172 = arith.addf %169, %171 : vector<5x128xf32>
    %cst_53 = arith.constant 1.702000e+00 : f32
    %173 = vector.broadcast %cst_53 : f32 to vector<5x128xf32>
    %174 = arith.mulf %173, %172 : vector<5x128xf32>
    %175 = arith.negf %174 : vector<5x128xf32>
    %176 = math.exp %175 : vector<5x128xf32>
    %cst_54 = arith.constant 1.000000e+00 : f32
    %177 = vector.broadcast %cst_54 : f32 to vector<5x128xf32>
    %178 = arith.addf %177, %176 : vector<5x128xf32>
    %179 = arith.divf %177, %178 : vector<5x128xf32>
    %180 = arith.mulf %172, %179 : vector<5x128xf32>
    %c0_55 = arith.constant 0 : index
    %c0_56 = arith.constant 0 : index
    %c0_57 = arith.constant 0 : index
    %181 = vector.load %arg5[%c0_55, %c0_56, %c0_57] : memref<2x128x32xf32, #tpu.memory_space<vmem>>, vector<1x128x32xf32>
    %182 = vector.shape_cast %181 : vector<1x128x32xf32> to vector<128x32xf32>
    %cst_58 = arith.constant dense<0.000000e+00> : vector<5x32xf32>
    %183 = tpu.matmul %180, %182, %cst_58 {dimension_numbers = #tpu.dot_dimension_numbers<[1], [0], [0], [1], [0, 0, 1, 1], [], []>} : vector<5x128xf32>, vector<128x32xf32>, vector<5x32xf32> -> vector<5x32xf32>
    %184 = vector.extract_strided_slice %37 {offsets = [7, 0], sizes = [1, 32], strides = [1, 1]} : vector<8x128xf32> to vector<1x32xf32>
    %185 = vector.broadcast %184 : vector<1x32xf32> to vector<5x32xf32>
    %186 = arith.addf %183, %185 : vector<5x32xf32>
    %187 = arith.addf %143, %186 : vector<5x32xf32>
    %c1 = arith.constant 1 : index
    %c0_59 = arith.constant 0 : index
    %c0_60 = arith.constant 0 : index
    %188 = vector.load %arg6[%c1, %c0_59, %c0_60] : memref<2x8x128xf32, #tpu.memory_space<vmem>>, vector<1x8x128xf32>
    %189 = vector.shape_cast %188 : vector<1x8x128xf32> to vector<8x128xf32>
    %c1_61 = arith.constant 1 : index
    %c0_62 = arith.constant 0 : index
    %c0_63 = arith.constant 0 : index
    %190 = vector.load %arg4[%c1_61, %c0_62, %c0_63] : memref<2x32x256xf32, #tpu.memory_space<vmem>>, vector<1x32x256xf32>
    %191 = vector.shape_cast %190 : vector<1x32x256xf32> to vector<32x256xf32>
    %192 = vector.extract_strided_slice %189 {offsets = [0, 0], sizes = [1, 32], strides = [1, 1]} : vector<8x128xf32> to vector<1x32xf32>
    %193 = vector.extract_strided_slice %189 {offsets = [1, 0], sizes = [1, 32], strides = [1, 1]} : vector<8x128xf32> to vector<1x32xf32>
    %cst_64 = arith.constant dense<0.000000e+00> : vector<5xf32>
    %194 = vector.multi_reduction <add>, %187, %cst_64 [1] : vector<5x32xf32> to vector<5xf32>
    %195 = vector.shape_cast %194 : vector<5xf32> to vector<5x1xf32>
    %cst_65 = arith.constant 3.200000e+01 : f32
    %196 = vector.broadcast %cst_65 : f32 to vector<5x1xf32>
    %197 = arith.divf %195, %196 : vector<5x1xf32>
    %198 = vector.broadcast %197 : vector<5x1xf32> to vector<5x32xf32>
    %199 = arith.subf %187, %198 : vector<5x32xf32>
    %200 = arith.mulf %199, %199 : vector<5x32xf32>
    %cst_66 = arith.constant dense<0.000000e+00> : vector<5xf32>
    %201 = vector.multi_reduction <add>, %200, %cst_66 [1] : vector<5x32xf32> to vector<5xf32>
    %202 = vector.shape_cast %201 : vector<5xf32> to vector<5x1xf32>
    %cst_67 = arith.constant 3.200000e+01 : f32
    %203 = vector.broadcast %cst_67 : f32 to vector<5x1xf32>
    %204 = arith.divf %202, %203 : vector<5x1xf32>
    %205 = vector.broadcast %197 : vector<5x1xf32> to vector<5x32xf32>
    %206 = arith.subf %187, %205 : vector<5x32xf32>
    %cst_68 = arith.constant 9.99999974E-6 : f32
    %207 = vector.broadcast %cst_68 : f32 to vector<5x1xf32>
    %208 = arith.addf %204, %207 : vector<5x1xf32>
    %209 = math.rsqrt %208 : vector<5x1xf32>
    %210 = vector.broadcast %209 : vector<5x1xf32> to vector<5x32xf32>
    %211 = arith.mulf %206, %210 : vector<5x32xf32>
    %212 = vector.broadcast %192 : vector<1x32xf32> to vector<5x32xf32>
    %213 = arith.mulf %211, %212 : vector<5x32xf32>
    %214 = vector.broadcast %193 : vector<1x32xf32> to vector<5x32xf32>
    %215 = arith.addf %213, %214 : vector<5x32xf32>
    %216 = vector.extract_strided_slice %191 {offsets = [0, 0], sizes = [32, 96], strides = [1, 1]} : vector<32x256xf32> to vector<32x96xf32>
    %cst_69 = arith.constant dense<0.000000e+00> : vector<5x96xf32>
    %217 = tpu.matmul %215, %216, %cst_69 {dimension_numbers = #tpu.dot_dimension_numbers<[1], [0], [0], [1], [0, 0, 1, 1], [], []>} : vector<5x32xf32>, vector<32x96xf32>, vector<5x96xf32> -> vector<5x96xf32>
    %218 = vector.extract_strided_slice %189 {offsets = [2, 0], sizes = [1, 96], strides = [1, 1]} : vector<8x128xf32> to vector<1x96xf32>
    %219 = vector.broadcast %218 : vector<1x96xf32> to vector<5x96xf32>
    %220 = arith.addf %217, %219 : vector<5x96xf32>
    %221 = vector.extract_strided_slice %220 {offsets = [0, 0], sizes = [5, 8], strides = [1, 1]} : vector<5x96xf32> to vector<5x8xf32>
    %222 = vector.extract_strided_slice %220 {offsets = [0, 32], sizes = [5, 8], strides = [1, 1]} : vector<5x96xf32> to vector<5x8xf32>
    %223 = vector.extract_strided_slice %220 {offsets = [0, 64], sizes = [5, 8], strides = [1, 1]} : vector<5x96xf32> to vector<5x8xf32>
    %cst_70 = arith.constant dense<0.000000e+00> : vector<5x5xf32>
    %224 = tpu.matmul %221, %222, %cst_70 {dimension_numbers = #tpu.dot_dimension_numbers<[1], [1], [0], [0], [0, 0, 1, 0], [], []>} : vector<5x8xf32>, vector<5x8xf32>, vector<5x5xf32> -> vector<5x5xf32>
    %cst_71 = arith.constant 0.353553385 : f32
    %225 = vector.broadcast %cst_71 : f32 to vector<5x5xf32>
    %226 = arith.mulf %224, %225 : vector<5x5xf32>
    %cst_72 = arith.constant dense<0xFF800000> : vector<5xf32>
    %227 = vector.multi_reduction <maximumf>, %226, %cst_72 [1] : vector<5x5xf32> to vector<5xf32>
    %228 = vector.shape_cast %227 : vector<5xf32> to vector<5x1xf32>
    %229 = vector.broadcast %228 : vector<5x1xf32> to vector<5x5xf32>
    %230 = arith.subf %226, %229 : vector<5x5xf32>
    %231 = math.exp %230 : vector<5x5xf32>
    %cst_73 = arith.constant dense<0.000000e+00> : vector<5xf32>
    %232 = vector.multi_reduction <add>, %231, %cst_73 [1] : vector<5x5xf32> to vector<5xf32>
    %233 = vector.shape_cast %232 : vector<5xf32> to vector<5x1xf32>
    %234 = tpu.reciprocal %233 {approx = true} : vector<5x1xf32> -> vector<5x1xf32>
    %235 = vector.broadcast %234 : vector<5x1xf32> to vector<5x5xf32>
    %236 = arith.mulf %231, %235 : vector<5x5xf32>
    %cst_74 = arith.constant dense<0.000000e+00> : vector<5x8xf32>
    %237 = tpu.matmul %236, %223, %cst_74 {dimension_numbers = #tpu.dot_dimension_numbers<[1], [0], [0], [1], [0, 0, 1, 1], [], []>} : vector<5x5xf32>, vector<5x8xf32>, vector<5x8xf32> -> vector<5x8xf32>
    %238 = vector.extract_strided_slice %220 {offsets = [0, 8], sizes = [5, 8], strides = [1, 1]} : vector<5x96xf32> to vector<5x8xf32>
    %239 = vector.extract_strided_slice %220 {offsets = [0, 40], sizes = [5, 8], strides = [1, 1]} : vector<5x96xf32> to vector<5x8xf32>
    %240 = vector.extract_strided_slice %220 {offsets = [0, 72], sizes = [5, 8], strides = [1, 1]} : vector<5x96xf32> to vector<5x8xf32>
    %cst_75 = arith.constant dense<0.000000e+00> : vector<5x5xf32>
    %241 = tpu.matmul %238, %239, %cst_75 {dimension_numbers = #tpu.dot_dimension_numbers<[1], [1], [0], [0], [0, 0, 1, 0], [], []>} : vector<5x8xf32>, vector<5x8xf32>, vector<5x5xf32> -> vector<5x5xf32>
    %cst_76 = arith.constant 0.353553385 : f32
    %242 = vector.broadcast %cst_76 : f32 to vector<5x5xf32>
    %243 = arith.mulf %241, %242 : vector<5x5xf32>
    %cst_77 = arith.constant dense<0xFF800000> : vector<5xf32>
    %244 = vector.multi_reduction <maximumf>, %243, %cst_77 [1] : vector<5x5xf32> to vector<5xf32>
    %245 = vector.shape_cast %244 : vector<5xf32> to vector<5x1xf32>
    %246 = vector.broadcast %245 : vector<5x1xf32> to vector<5x5xf32>
    %247 = arith.subf %243, %246 : vector<5x5xf32>
    %248 = math.exp %247 : vector<5x5xf32>
    %cst_78 = arith.constant dense<0.000000e+00> : vector<5xf32>
    %249 = vector.multi_reduction <add>, %248, %cst_78 [1] : vector<5x5xf32> to vector<5xf32>
    %250 = vector.shape_cast %249 : vector<5xf32> to vector<5x1xf32>
    %251 = tpu.reciprocal %250 {approx = true} : vector<5x1xf32> -> vector<5x1xf32>
    %252 = vector.broadcast %251 : vector<5x1xf32> to vector<5x5xf32>
    %253 = arith.mulf %248, %252 : vector<5x5xf32>
    %cst_79 = arith.constant dense<0.000000e+00> : vector<5x8xf32>
    %254 = tpu.matmul %253, %240, %cst_79 {dimension_numbers = #tpu.dot_dimension_numbers<[1], [0], [0], [1], [0, 0, 1, 1], [], []>} : vector<5x5xf32>, vector<5x8xf32>, vector<5x8xf32> -> vector<5x8xf32>
    %255 = vector.extract_strided_slice %220 {offsets = [0, 16], sizes = [5, 8], strides = [1, 1]} : vector<5x96xf32> to vector<5x8xf32>
    %256 = vector.extract_strided_slice %220 {offsets = [0, 48], sizes = [5, 8], strides = [1, 1]} : vector<5x96xf32> to vector<5x8xf32>
    %257 = vector.extract_strided_slice %220 {offsets = [0, 80], sizes = [5, 8], strides = [1, 1]} : vector<5x96xf32> to vector<5x8xf32>
    %cst_80 = arith.constant dense<0.000000e+00> : vector<5x5xf32>
    %258 = tpu.matmul %255, %256, %cst_80 {dimension_numbers = #tpu.dot_dimension_numbers<[1], [1], [0], [0], [0, 0, 1, 0], [], []>} : vector<5x8xf32>, vector<5x8xf32>, vector<5x5xf32> -> vector<5x5xf32>
    %cst_81 = arith.constant 0.353553385 : f32
    %259 = vector.broadcast %cst_81 : f32 to vector<5x5xf32>
    %260 = arith.mulf %258, %259 : vector<5x5xf32>
    %cst_82 = arith.constant dense<0xFF800000> : vector<5xf32>
    %261 = vector.multi_reduction <maximumf>, %260, %cst_82 [1] : vector<5x5xf32> to vector<5xf32>
    %262 = vector.shape_cast %261 : vector<5xf32> to vector<5x1xf32>
    %263 = vector.broadcast %262 : vector<5x1xf32> to vector<5x5xf32>
    %264 = arith.subf %260, %263 : vector<5x5xf32>
    %265 = math.exp %264 : vector<5x5xf32>
    %cst_83 = arith.constant dense<0.000000e+00> : vector<5xf32>
    %266 = vector.multi_reduction <add>, %265, %cst_83 [1] : vector<5x5xf32> to vector<5xf32>
    %267 = vector.shape_cast %266 : vector<5xf32> to vector<5x1xf32>
    %268 = tpu.reciprocal %267 {approx = true} : vector<5x1xf32> -> vector<5x1xf32>
    %269 = vector.broadcast %268 : vector<5x1xf32> to vector<5x5xf32>
    %270 = arith.mulf %265, %269 : vector<5x5xf32>
    %cst_84 = arith.constant dense<0.000000e+00> : vector<5x8xf32>
    %271 = tpu.matmul %270, %257, %cst_84 {dimension_numbers = #tpu.dot_dimension_numbers<[1], [0], [0], [1], [0, 0, 1, 1], [], []>} : vector<5x5xf32>, vector<5x8xf32>, vector<5x8xf32> -> vector<5x8xf32>
    %272 = vector.extract_strided_slice %220 {offsets = [0, 24], sizes = [5, 8], strides = [1, 1]} : vector<5x96xf32> to vector<5x8xf32>
    %273 = vector.extract_strided_slice %220 {offsets = [0, 56], sizes = [5, 8], strides = [1, 1]} : vector<5x96xf32> to vector<5x8xf32>
    %274 = vector.extract_strided_slice %220 {offsets = [0, 88], sizes = [5, 8], strides = [1, 1]} : vector<5x96xf32> to vector<5x8xf32>
    %cst_85 = arith.constant dense<0.000000e+00> : vector<5x5xf32>
    %275 = tpu.matmul %272, %273, %cst_85 {dimension_numbers = #tpu.dot_dimension_numbers<[1], [1], [0], [0], [0, 0, 1, 0], [], []>} : vector<5x8xf32>, vector<5x8xf32>, vector<5x5xf32> -> vector<5x5xf32>
    %cst_86 = arith.constant 0.353553385 : f32
    %276 = vector.broadcast %cst_86 : f32 to vector<5x5xf32>
    %277 = arith.mulf %275, %276 : vector<5x5xf32>
    %cst_87 = arith.constant dense<0xFF800000> : vector<5xf32>
    %278 = vector.multi_reduction <maximumf>, %277, %cst_87 [1] : vector<5x5xf32> to vector<5xf32>
    %279 = vector.shape_cast %278 : vector<5xf32> to vector<5x1xf32>
    %280 = vector.broadcast %279 : vector<5x1xf32> to vector<5x5xf32>
    %281 = arith.subf %277, %280 : vector<5x5xf32>
    %282 = math.exp %281 : vector<5x5xf32>
    %cst_88 = arith.constant dense<0.000000e+00> : vector<5xf32>
    %283 = vector.multi_reduction <add>, %282, %cst_88 [1] : vector<5x5xf32> to vector<5xf32>
    %284 = vector.shape_cast %283 : vector<5xf32> to vector<5x1xf32>
    %285 = tpu.reciprocal %284 {approx = true} : vector<5x1xf32> -> vector<5x1xf32>
    %286 = vector.broadcast %285 : vector<5x1xf32> to vector<5x5xf32>
    %287 = arith.mulf %282, %286 : vector<5x5xf32>
    %cst_89 = arith.constant dense<0.000000e+00> : vector<5x8xf32>
    %288 = tpu.matmul %287, %274, %cst_89 {dimension_numbers = #tpu.dot_dimension_numbers<[1], [0], [0], [1], [0, 0, 1, 1], [], []>} : vector<5x5xf32>, vector<5x8xf32>, vector<5x8xf32> -> vector<5x8xf32>
    %289 = tpu.concatenate %237, %254, %271, %288 in 1 : vector<5x8xf32>, vector<5x8xf32>, vector<5x8xf32>, vector<5x8xf32> -> vector<5x32xf32>
    %290 = vector.extract_strided_slice %191 {offsets = [0, 96], sizes = [32, 32], strides = [1, 1]} : vector<32x256xf32> to vector<32x32xf32>
    %cst_90 = arith.constant dense<0.000000e+00> : vector<5x32xf32>
    %291 = tpu.matmul %289, %290, %cst_90 {dimension_numbers = #tpu.dot_dimension_numbers<[1], [0], [0], [1], [0, 0, 1, 1], [], []>} : vector<5x32xf32>, vector<32x32xf32>, vector<5x32xf32> -> vector<5x32xf32>
    %292 = vector.extract_strided_slice %189 {offsets = [3, 0], sizes = [1, 32], strides = [1, 1]} : vector<8x128xf32> to vector<1x32xf32>
    %293 = vector.broadcast %292 : vector<1x32xf32> to vector<5x32xf32>
    %294 = arith.addf %291, %293 : vector<5x32xf32>
    %295 = arith.addf %187, %294 : vector<5x32xf32>
    %296 = vector.extract_strided_slice %189 {offsets = [4, 0], sizes = [1, 32], strides = [1, 1]} : vector<8x128xf32> to vector<1x32xf32>
    %297 = vector.extract_strided_slice %189 {offsets = [5, 0], sizes = [1, 32], strides = [1, 1]} : vector<8x128xf32> to vector<1x32xf32>
    %cst_91 = arith.constant dense<0.000000e+00> : vector<5xf32>
    %298 = vector.multi_reduction <add>, %295, %cst_91 [1] : vector<5x32xf32> to vector<5xf32>
    %299 = vector.shape_cast %298 : vector<5xf32> to vector<5x1xf32>
    %cst_92 = arith.constant 3.200000e+01 : f32
    %300 = vector.broadcast %cst_92 : f32 to vector<5x1xf32>
    %301 = arith.divf %299, %300 : vector<5x1xf32>
    %302 = vector.broadcast %301 : vector<5x1xf32> to vector<5x32xf32>
    %303 = arith.subf %295, %302 : vector<5x32xf32>
    %304 = arith.mulf %303, %303 : vector<5x32xf32>
    %cst_93 = arith.constant dense<0.000000e+00> : vector<5xf32>
    %305 = vector.multi_reduction <add>, %304, %cst_93 [1] : vector<5x32xf32> to vector<5xf32>
    %306 = vector.shape_cast %305 : vector<5xf32> to vector<5x1xf32>
    %cst_94 = arith.constant 3.200000e+01 : f32
    %307 = vector.broadcast %cst_94 : f32 to vector<5x1xf32>
    %308 = arith.divf %306, %307 : vector<5x1xf32>
    %309 = vector.broadcast %301 : vector<5x1xf32> to vector<5x32xf32>
    %310 = arith.subf %295, %309 : vector<5x32xf32>
    %cst_95 = arith.constant 9.99999974E-6 : f32
    %311 = vector.broadcast %cst_95 : f32 to vector<5x1xf32>
    %312 = arith.addf %308, %311 : vector<5x1xf32>
    %313 = math.rsqrt %312 : vector<5x1xf32>
    %314 = vector.broadcast %313 : vector<5x1xf32> to vector<5x32xf32>
    %315 = arith.mulf %310, %314 : vector<5x32xf32>
    %316 = vector.broadcast %296 : vector<1x32xf32> to vector<5x32xf32>
    %317 = arith.mulf %315, %316 : vector<5x32xf32>
    %318 = vector.broadcast %297 : vector<1x32xf32> to vector<5x32xf32>
    %319 = arith.addf %317, %318 : vector<5x32xf32>
    %320 = vector.extract_strided_slice %191 {offsets = [0, 128], sizes = [32, 128], strides = [1, 1]} : vector<32x256xf32> to vector<32x128xf32>
    %cst_96 = arith.constant dense<0.000000e+00> : vector<5x128xf32>
    %321 = tpu.matmul %319, %320, %cst_96 {dimension_numbers = #tpu.dot_dimension_numbers<[1], [0], [0], [1], [0, 0, 1, 1], [], []>} : vector<5x32xf32>, vector<32x128xf32>, vector<5x128xf32> -> vector<5x128xf32>
    %322 = vector.extract_strided_slice %189 {offsets = [6, 0], sizes = [1, 128], strides = [1, 1]} : vector<8x128xf32> to vector<1x128xf32>
    %323 = vector.broadcast %322 : vector<1x128xf32> to vector<5x128xf32>
    %324 = arith.addf %321, %323 : vector<5x128xf32>
    %cst_97 = arith.constant 1.702000e+00 : f32
    %325 = vector.broadcast %cst_97 : f32 to vector<5x128xf32>
    %326 = arith.mulf %325, %324 : vector<5x128xf32>
    %327 = arith.negf %326 : vector<5x128xf32>
    %328 = math.exp %327 : vector<5x128xf32>
    %cst_98 = arith.constant 1.000000e+00 : f32
    %329 = vector.broadcast %cst_98 : f32 to vector<5x128xf32>
    %330 = arith.addf %329, %328 : vector<5x128xf32>
    %331 = arith.divf %329, %330 : vector<5x128xf32>
    %332 = arith.mulf %324, %331 : vector<5x128xf32>
    %c1_99 = arith.constant 1 : index
    %c0_100 = arith.constant 0 : index
    %c0_101 = arith.constant 0 : index
    %333 = vector.load %arg5[%c1_99, %c0_100, %c0_101] : memref<2x128x32xf32, #tpu.memory_space<vmem>>, vector<1x128x32xf32>
    %334 = vector.shape_cast %333 : vector<1x128x32xf32> to vector<128x32xf32>
    %cst_102 = arith.constant dense<0.000000e+00> : vector<5x32xf32>
    %335 = tpu.matmul %332, %334, %cst_102 {dimension_numbers = #tpu.dot_dimension_numbers<[1], [0], [0], [1], [0, 0, 1, 1], [], []>} : vector<5x128xf32>, vector<128x32xf32>, vector<5x32xf32> -> vector<5x32xf32>
    %336 = vector.extract_strided_slice %189 {offsets = [7, 0], sizes = [1, 32], strides = [1, 1]} : vector<8x128xf32> to vector<1x32xf32>
    %337 = vector.broadcast %336 : vector<1x32xf32> to vector<5x32xf32>
    %338 = arith.addf %335, %337 : vector<5x32xf32>
    %339 = arith.addf %295, %338 : vector<5x32xf32>
    %340 = vector.shape_cast %339 : vector<5x32xf32> to vector<1x5x32xf32>
    %341 = vector.extract_strided_slice %340 {offsets = [0, 0, 0], sizes = [1, 1, 32], strides = [1, 1, 1]} : vector<1x5x32xf32> to vector<1x1x32xf32>
    %342 = vector.shape_cast %341 : vector<1x1x32xf32> to vector<1x32xf32>
    %343 = vector.extract_strided_slice %0 {offsets = [2, 0], sizes = [1, 32], strides = [1, 1]} : vector<8x128xf32> to vector<1x32xf32>
    %344 = vector.extract_strided_slice %0 {offsets = [3, 0], sizes = [1, 32], strides = [1, 1]} : vector<8x128xf32> to vector<1x32xf32>
    %cst_103 = arith.constant dense<0.000000e+00> : vector<1xf32>
    %345 = vector.multi_reduction <add>, %342, %cst_103 [1] : vector<1x32xf32> to vector<1xf32>
    %346 = vector.shape_cast %345 : vector<1xf32> to vector<1x1xf32>
    %cst_104 = arith.constant 3.200000e+01 : f32
    %347 = vector.broadcast %cst_104 : f32 to vector<1x1xf32>
    %348 = arith.divf %346, %347 : vector<1x1xf32>
    %349 = vector.broadcast %348 : vector<1x1xf32> to vector<1x32xf32>
    %350 = arith.subf %342, %349 : vector<1x32xf32>
    %351 = arith.mulf %350, %350 : vector<1x32xf32>
    %cst_105 = arith.constant dense<0.000000e+00> : vector<1xf32>
    %352 = vector.multi_reduction <add>, %351, %cst_105 [1] : vector<1x32xf32> to vector<1xf32>
    %353 = vector.shape_cast %352 : vector<1xf32> to vector<1x1xf32>
    %cst_106 = arith.constant 3.200000e+01 : f32
    %354 = vector.broadcast %cst_106 : f32 to vector<1x1xf32>
    %355 = arith.divf %353, %354 : vector<1x1xf32>
    %356 = vector.broadcast %348 : vector<1x1xf32> to vector<1x32xf32>
    %357 = arith.subf %342, %356 : vector<1x32xf32>
    %cst_107 = arith.constant 9.99999974E-6 : f32
    %358 = vector.broadcast %cst_107 : f32 to vector<1x1xf32>
    %359 = arith.addf %355, %358 : vector<1x1xf32>
    %360 = math.rsqrt %359 : vector<1x1xf32>
    %361 = vector.broadcast %360 : vector<1x1xf32> to vector<1x32xf32>
    %362 = arith.mulf %357, %361 : vector<1x32xf32>
    %363 = arith.mulf %362, %343 : vector<1x32xf32>
    %364 = arith.addf %363, %344 : vector<1x32xf32>
    %c0_108 = arith.constant 0 : index
    %c0_109 = arith.constant 0 : index
    %365 = vector.load %arg8[%c0_108, %c0_109] : memref<32x512xf32, #tpu.memory_space<vmem>>, vector<32x512xf32>
    %cst_110 = arith.constant dense<0.000000e+00> : vector<1x512xf32>
    %366 = tpu.matmul %364, %365, %cst_110 {dimension_numbers = #tpu.dot_dimension_numbers<[1], [0], [0], [1], [0, 0, 1, 1], [], []>} : vector<1x32xf32>, vector<32x512xf32>, vector<1x512xf32> -> vector<1x512xf32>
    %367 = arith.mulf %366, %366 : vector<1x512xf32>
    %cst_111 = arith.constant dense<0.000000e+00> : vector<1xf32>
    %368 = vector.multi_reduction <add>, %367, %cst_111 [1] : vector<1x512xf32> to vector<1xf32>
    %369 = vector.shape_cast %368 : vector<1xf32> to vector<1x1xf32>
    %cst_112 = arith.constant 9.99999996E-13 : f32
    %370 = vector.broadcast %cst_112 : f32 to vector<1x1xf32>
    %371 = arith.addf %369, %370 : vector<1x1xf32>
    %372 = math.rsqrt %371 : vector<1x1xf32>
    %373 = vector.broadcast %372 : vector<1x1xf32> to vector<1x512xf32>
    %374 = arith.mulf %366, %373 : vector<1x512xf32>
    %c0_113 = arith.constant 0 : index
    %c0_114 = arith.constant 0 : index
    %375 = vector.load %arg9[%c0_113, %c0_114] : memref<512x10xf32, #tpu.memory_space<vmem>>, vector<512x10xf32>
    %cst_115 = arith.constant dense<0.000000e+00> : vector<1x10xf32>
    %376 = tpu.matmul %374, %375, %cst_115 {dimension_numbers = #tpu.dot_dimension_numbers<[1], [0], [0], [1], [0, 0, 1, 1], [], []>} : vector<1x512xf32>, vector<512x10xf32>, vector<1x10xf32> -> vector<1x10xf32>
    %377 = vector.extract_strided_slice %0 {offsets = [4, 0], sizes = [1, 10], strides = [1, 1]} : vector<8x128xf32> to vector<1x10xf32>
    %378 = arith.addf %376, %377 : vector<1x10xf32>
    %c0_116 = arith.constant 0 : index
    %c0_117 = arith.constant 0 : index
    %c0_118 = arith.constant 0 : index
    %379 = vector.load %arg10[%c0_116, %c0_117, %c0_118] : memref<1x1x10xf32, #tpu.memory_space<vmem>>, vector<1x1x10xf32>
    %380 = vector.shape_cast %379 : vector<1x1x10xf32> to vector<1x10xf32>
    %381 = vector.shape_cast %378 : vector<1x10xf32> to vector<1x1x10xf32>
    tpu.vector_store %arg10[%c0_116, %c0_117, %c0_118], %381 {strides = array<i32>} : memref<1x1x10xf32, #tpu.memory_space<vmem>>, vector<1x1x10xf32>,
    return
  }
  func.func @transform_0(%arg0: i32) -> (i32, i32, i32) {
    %c0_i32 = arith.constant 0 : i32
    %c0_i32_0 = arith.constant 0 : i32
    %c0_i32_1 = arith.constant 0 : i32
    return %arg0, %c0_i32, %c0_i32_0 : i32, i32, i32
  }
  func.func @transform_1(%arg0: i32) -> (i32, i32) {
    %c0_i32 = arith.constant 0 : i32
    %c0_i32_0 = arith.constant 0 : i32
    %c0_i32_1 = arith.constant 0 : i32
    return %c0_i32, %c0_i32_0 : i32, i32
  }
  func.func @transform_2(%arg0: i32) -> (i32, i32) {
    %c0_i32 = arith.constant 0 : i32
    %c0_i32_0 = arith.constant 0 : i32
    %c0_i32_1 = arith.constant 0 : i32
    return %c0_i32, %c0_i32_0 : i32, i32
  }
  func.func @transform_3(%arg0: i32) -> (i32, i32, i32) {
    %c0_i32 = arith.constant 0 : i32
    %c0_i32_0 = arith.constant 0 : i32
    %c0_i32_1 = arith.constant 0 : i32
    %c0_i32_2 = arith.constant 0 : i32
    return %c0_i32, %c0_i32_0, %c0_i32_1 : i32, i32, i32
  }
  func.func @transform_4(%arg0: i32) -> (i32, i32, i32) {
    %c0_i32 = arith.constant 0 : i32
    %c0_i32_0 = arith.constant 0 : i32
    %c0_i32_1 = arith.constant 0 : i32
    %c0_i32_2 = arith.constant 0 : i32
    return %c0_i32, %c0_i32_0, %c0_i32_1 : i32, i32, i32
  }
  func.func @transform_5(%arg0: i32) -> (i32, i32, i32) {
    %c0_i32 = arith.constant 0 : i32
    %c0_i32_0 = arith.constant 0 : i32
    %c0_i32_1 = arith.constant 0 : i32
    %c0_i32_2 = arith.constant 0 : i32
    return %c0_i32, %c0_i32_0, %c0_i32_1 : i32, i32, i32
  }
  func.func @transform_6(%arg0: i32) -> (i32, i32) {
    %c0_i32 = arith.constant 0 : i32
    %c0_i32_0 = arith.constant 0 : i32
    %c0_i32_1 = arith.constant 0 : i32
    return %c0_i32, %c0_i32_0 : i32, i32
  }
  func.func @transform_7(%arg0: i32) -> (i32, i32) {
    %c0_i32 = arith.constant 0 : i32
    %c0_i32_0 = arith.constant 0 : i32
    %c0_i32_1 = arith.constant 0 : i32
    return %c0_i32, %c0_i32_0 : i32, i32
  }
  func.func @transform_8(%arg0: i32) -> (i32, i32) {
    %c0_i32 = arith.constant 0 : i32
    %c0_i32_0 = arith.constant 0 : i32
    %c0_i32_1 = arith.constant 0 : i32
    return %c0_i32, %c0_i32_0 : i32, i32
  }
  func.func @transform_9(%arg0: i32) -> (i32, i32, i32) {
    %c0_i32 = arith.constant 0 : i32
    %c0_i32_0 = arith.constant 0 : i32
    %c0_i32_1 = arith.constant 0 : i32
    return %arg0, %c0_i32, %c0_i32_0 : i32, i32, i32
  }
}

</mosaic_0001>

<bundles_post_ra>
// kernel: clip_image_classifier_forward.1
= control target key start
LH: loop header
LB: loop body
LE: loop exit
PB: predicated region body
PF: predicated region fallthrough
CT: control target
= control target key end

     0   :  { %14 = vsyncpa [#allocation3], 0  ;;  %s2972_s0 = inlined_call_operand.vmem [shape: f32[2,4,192], index: 0, kind: input, shape index: {}]   ;;  %s2973_s1 = inlined_call_operand.vmem [shape: f32[192,32], index: 1, kind: input, shape index: {}]   ;;  %s2974_s2 = inlined_call_operand.vmem [shape: f32[5,32], index: 2, kind: input, shape index: {}]   ;;  %s2975_s3 = inlined_call_operand.vmem [shape: f32[2,32,256], index: 3, kind: input, shape index: {}]   ;;  %s2976_s4 = inlined_call_operand.vmem [shape: f32[2,128,32], index: 4, kind: input, shape index: {}]   ;;  %s2977_s5 = inlined_call_operand.vmem [shape: f32[2,8,128], index: 5, kind: input, shape index: {}]   ;;  %s2978_s6 = inlined_call_operand.vmem [shape: f32[8,128], index: 6, kind: input, shape index: {}]   ;;  %s2979_s7 = inlined_call_operand.vmem [shape: f32[32,512], index: 7, kind: input, shape index: {}]   ;;  %s2980_s8 = inlined_call_operand.vmem [shape: f32[512,10], index: 8, kind: input, shape index: {}]   ;;  %s2981_s9 = inlined_call_operand.hbm [shape: f32[2,1,10], index: 9, kind: output, shape index: {}]  }
   0x1   :  { %16 = vsyncpa [#allocation3 + $0x1], 0  ;;  %s2151_s30 = smov 0   ;;  %s2153_s10 = smov 0  }
   0x2   :  { %s2155_s11 = smov 0   ;;  %s2157_s12 = smov 0  }
   0x3 LB: > { %s2172_s13 = sadd.s32 4294967295, %s2083_s12   ;;  %s1810_s14 = sadd.s32 4294967294, %s2083_s12   ;;  %s2083_s12 = sphi %s2157_s12, %s3014_s12   ;;  %s2079_s11 = sphi %s2155_s11, %s3013_s11   ;;  %s2075_s10 = sphi %s2153_s10, %s3012_s10   ;;  %s2071_s30 = sphi %s2151_s30, %s3011_s30  }
   0x4   : > { %s2176_s15 = sadd.s32 1, %s2083_s12   ;;  %s223_s16 = sadd.s32 1, %s2079_s11 }
   0x5   : > { %s220_s17 = ssub.s32 %s2083_s12, %s2176_s15  ;;  %p233_p0 = scmp.ne.s32.totalorder %s2079_s11, %s2075_s10 }
   0x6   : > { %p221_p1 = scmp.eq.s32.totalorder %s220_s17, 0  ;;  %p234_p2 = scmp.eq.s32.totalorder %s2172_s13, 1 }
   0x7   : > { %p239_p3 = scmp.ne.s32.totalorder %s2075_s10, %s2071_s30  ;;  %p240_p4 = scmp.eq.s32.totalorder %s1810_s14, 1 }
   0x8   : > { %s2187_s18 = scalar_select %p221_p1, %s2079_s11, %s223_s16  }
   0x9   : > { %p2189_p5 = por %p234_p2, %p233_p0  ;;  %p2193_p6 = por %p240_p4, %p239_p3 }
   0xa   : > { %2995 = sst [smem:[#allocation5_spill]] %s2187_s18  ;;  %p1813_p7 = scmp.ge.s32.totalorder %s2083_s12, 1 }
   0xb   : > { %p290_p8 = scmp.lt.s32.totalorder %s2083_s12, 3 }
   0xd   : > { %p291_p9 = pnand %p1813_p7, %p290_p8 }
   0xe   : > { %p325_p10 = scmp.lt.s32.totalorder (!%p291_p9), %s2172_s13, 1  ;;  %s2087_s24 = smov (!%p291_p9), 96  }
   0xf   : > { %294 = sbr.rel (%p291_p9) target bundleno = 6004 (0x1774), region = 56  ;;  %s2088_s25 = smov (!%p291_p9), 120  }
  0x10   : > { %s2992_s26 = smov (!%p291_p9), 56   ;;  %s2989_s29 = smov (!%p291_p9), 80  }
  0x11   : > { %s2991_s14 = smov (!%p291_p9), 104   ;;  %s2093_s16 = smov (!%p291_p9), 88  }
  0x12   : > { %s2988_s17 = smov (!%p291_p9), 48   ;;  %s2982_s21 = smov (!%p291_p9), 40  }
  0x13   : > { %s2987_s23 = smov (!%p291_p9), 8   ;;  %s2983_s18 = smov (!%p291_p9), 32  }
  0x14   : > { %v347_v0 = vld [vmem:[%s2973_s1 + $0x78] sm:$0xff]  ;;  %v346_v1 = vld [vmem:[%s2973_s1 + $0x70] sm:$0xff]  ;;  %v345_v2 = vld [vmem:[%s2973_s1 + $0x68] sm:$0xff]  ;;  %s326_s27 = scalar_select %p325_p10, %s2172_s13, 1  ;;  %vm361_vm0 = vcmask 523264   ;;  %vm407_vm1 = vcmask 1040384  }
  0x15   : > { %364 = vmatpush.msra.mxu0 %v347_v0  ;;  %v355_v3 = vld [vmem:[%s2973_s1 + $0xb8] sm:$0xff]  ;;  %v354_v4 = vld [vmem:[%s2973_s1 + $0xb0] sm:$0xff]  ;;  %v344_v5 = vld [vmem:[%s2973_s1 + $0x60] sm:$0xff]  ;;  %vm411_vm2 = vcmask 258048   ;;  %v2085_v35 = vmov 32.0   ;;  %vm481_vm10 = vcmask 261120  }
  0x16   : > { %392 = vmatpush.msra.mxu1 %v355_v3  ;;  %s1888_s22 = sshll.u32 %s326_s27, 3  ;;  %v353_v6 = vld [vmem:[%s2973_s1 + $0xa8] sm:$0xff]  ;;  %v343_v7 = vld [vmem:[%s2973_s1 + $0x58] sm:$0xff]  ;;  %v352_v8 = vld [vmem:[%s2973_s1 + $0xa0] sm:$0xff]  ;;  %1964 = vrcp.f32 %v2085_v35  ;;  %vm508_vm11 = vcmask 64512   ;;  %vm552_vm12 = vcmask 1044480  }
  0x17   : > { %365 = vmatpush.msra.mxu0 %v346_v1  ;;  %s329_s28 = scalar_lea.vmem %s2972_s0, %s1888_s22  ;;  %v342_v9 = vld [vmem:[%s2973_s1 + $0x50] sm:$0xff]  ;;  %v351_v11 = vld [vmem:[%s2973_s1 + $0x98] sm:$0xff]  ;;  %v341_v12 = vld [vmem:[%s2973_s1 + $0x48] sm:$0xff]  ;;  %s2994_s22 = smov 64   ;;  %vm534_vm13 = vcmask 36864   ;;  %vm548_vm14 = vcmask 39936  }
  0x18   : > { %393 = vmatpush.msra.mxu1 %v354_v4  ;;  %v331_v10 = vld [vmem:[%s329_s28] sm:$0xff]  ;;  %v350_v13 = vld [vmem:[%s2973_s1 + $0x90] sm:$0xff]  ;;  %v349_v15 = vld [vmem:[%s2973_s1 + $0x88] sm:$0xff]  ;;  %s2993_s28 = smov 72   ;;  %s2990_s27 = smov 112   ;;  %vm789_vm15 = vcmask 130048  }
  0x19   : > { %366 = vmatpush.msra.mxu0 %v345_v2  ;;  %357 = vst [vmem:[#allocation1] ss:$2 sm:$0xff] %v331_v10  ;;  %v340_v14 = vld [vmem:[%s2973_s1 + $0x40] sm:$0xff]  ;;  %v339_v16 = vld [vmem:[%s2973_s1 + $0x38] sm:$0xff]  ;;  %v338_v18 = vld [vmem:[%s2973_s1 + $0x30] sm:$0xff] }
  0x1a   : > { %394 = vmatpush.msra.mxu1 %v353_v6  ;;  %v348_v17 = vld [vmem:[%s2973_s1 + $0x80] sm:$0xff]  ;;  %v337_v20 = vld [vmem:[%s2973_s1 + $0x28] sm:$0xff]  ;;  %v335_v22 = vld [vmem:[%s2973_s1 + $0x18] sm:$0xff] }
  0x1b   : > { %367 = vmatpush.msra.mxu0 %v344_v5  ;;  %v336_v21 = vld [vmem:[%s2973_s1 + $0x20] sm:$0xff]  ;;  %v334_v23 = vld [vmem:[%s2973_s1 + $0x10] sm:$0xff]  ;;  %v333_v24 = vld [vmem:[%s2973_s1 + $0x8] sm:$0xff] }
  0x1c   : > { %395 = vmatpush.msra.mxu1 %v352_v8  ;;  %v332_v25 = vld [vmem:[%s2973_s1] sm:$0xff]  ;;  %v1965_v36 = vpop.eup %1964  ;;  %v2299_v5 = vld [vmem:[%s2975_s3 + $0x30] sm:$0xff] }
  0x1d   : > { %368 = vmatpush.msra.mxu0 %v343_v7  ;;  %v409_v31 = vld [vmem:[%s2974_s2] sm:$0x1f]  ;;  %v416_v37 = vmul.f32 32.0, %v1965_v36  ;;  %vm420_vm3 = vweird.f32 %v1965_v36  ;;  %497 = vmatpush.msra.mxu2 %v2299_v5  ;;  %v2310_v7 = vld [vmem:[%s2975_s3 + $0x10] sm:$0xff] }
  0x1e   : > { %396 = vmatpush.msra.mxu1 %v351_v11  ;;  %v330_v55 = vld [vmem:[%s2978_s6] sm:$0xff] }
  0x1f   : > { %369 = vmatpush.msra.mxu0 %v342_v9  ;;  %v417_v38 = vsub.f32 1.0, %v416_v37  ;;  %v441_v57 = vperm.slane %v330_v55, 0  ;;  %v443_v60 = vperm.slane %v330_v55, 1  ;;  %v2305_v6 = vld [vmem:[%s2975_s3 + $0x20] sm:$0xff] }
  0x20   : > { %397 = vmatpush.msra.mxu1 %v350_v13  ;;  %v359_v19 = vld.sshfl [vmem:[#allocation1 + $0x8] sm:$0xff pattern:$0x75316420]  ;;  %v358_v26 = vld.sshfl [vmem:[#allocation1] sm:$0xff pattern:$0x75316420]  ;;  %v1944_v9 = vpack.i.bf16 %v2305_v6, %v2299_v5  ;;  %498 = vmatpush.msra.mxu2 %v2305_v6 }
  0x21   : > { %370 = vmatpush.msra.mxu0 %v341_v12  ;;  %v418_v39 = vmul.f32 %v1965_v36, %v417_v38  ;;  %v2315_v8 = vld [vmem:[%s2975_s3] sm:$0xff] }
  0x22   : > { %398 = vmatpush.msra.mxu1 %v349_v15  ;;  %v1949_v10 = vpack.i.bf16 %v2315_v8, %v2310_v7  ;;  %499 = vmatpush.msra.mxu2 %v2310_v7 }
  0x23   : > { %371 = vmatpush.msra.mxu0 %v340_v14  ;;  %v419_v40 = vadd.f32 %v1965_v36, %v418_v39 }
  0x24   : > { %399 = vmatpush.msra.mxu1 %v348_v17  ;;  %500 = vmatpush.msra.mxu2 %v2315_v8 }
  0x25   : > { %372 = vmatpush.msra.mxu0 %v339_v16  ;;  %1816 = vmatmul.msk.f32.vlgmr.msra.gmra.mxu1 %vm361_vm0, %v359_v19  ;;  %v2281_v41 = vsel %vm420_vm3, %v1965_v36, %v419_v40  ;;  %v2328_v19 = vld [vmem:[%s2977_s5] sm:$0xff]  ;;  %vm791_vm0 = vcmask 195584  }
  0x27   : > { %373 = vmatpush.msra.mxu0 %v338_v18 }
  0x29   : > { %374 = vmatpush.msra.mxu0 %v337_v20 }
  0x2b   : > { %375 = vmatpush.msra.mxu0 %v336_v21  ;;  %v476_v21 = vperm.slane %v2328_v19, 0 }
  0x2d   : > { %376 = vmatpush.msra.mxu0 %v335_v22 }
  0x2f   : > { %377 = vmatpush.msra.mxu0 %v334_v23 }
  0x31   : > { %378 = vmatpush.msra.mxu0 %v333_v24  ;;  %v478_v24 = vperm.slane %v2328_v19, 1 }
  0x33   : > { %379 = vmatpush.msra.mxu0 %v332_v25 }
  0x34   : > { %380 = vmatmul.f32.vlgmr.msra.gmra.mxu0 %v358_v26 }
  0xa2   : > { %v401_v27 = vpop.f32.mrf.mxu1 }
  0xb1   : > { %v381_v28 = vpop.f32.mrf.mxu0 }
  0xb2   : > { %v402_v29 = vadd.f32 %v401_v27, %v381_v28  ;;  %v480_v27 = vperm.slane %v2328_v19, 2 }
  0xb4   : > { %v405_v30 = vrot.slane %v402_v29, 7 }
  0xb6   : > { %v408_v32 = vsel %vm407_vm1, 0.0, %v405_v30 }
  0xb7   : > { %v410_v33 = vadd.f32 %v409_v31, %v408_v32 }
  0xb9   : > { %v412_v34 = vsel %vm411_vm2, %v410_v33, 0.0 }
  0xba   : > { %413 = vadd.xlane.f32.xlu0 %v412_v34 }
 0x12d   : > { %v414_v42 = vpop.xlane.xlu0 %413 }
 0x12e   : > { %v422_v43 = vmul.f32 %v2281_v41, %v414_v42 }
 0x130   : > { %v423_v44 = vsub.f32 %v410_v33, %v422_v43 }
 0x132   : > { %v424_v45 = vmul.f32 %v423_v44, %v423_v44 }
 0x134   : > { %v425_v46 = vsel %vm411_vm2, %v424_v45, 0.0 }
 0x135   : > { %426 = vadd.xlane.f32.xlu0 %v425_v46 }
 0x1a8   : > { %v427_v47 = vpop.xlane.xlu0 %426 }
 0x1a9   : > { %v428_v48 = vmul.f32 %v427_v47, %v2281_v41 }
 0x1ab   : > { %v429_v49 = vadd.f32 1e-05, %v428_v48 }
 0x1ad   : > { %1966 = vrsqrt.f32 %v429_v49  ;;  %vm436_vm5 = vweird.f32 %v429_v49 }
 0x1b3   : > { %v1967_v50 = vpop.eup %1966 }
 0x1b4   : > { %v431_v51 = vmul.f32 %v1967_v50, %v429_v49  ;;  %vm437_vm4 = vweird.f32 %v1967_v50 }
 0x1b5   : > { %vm438_vm6 = vmor %vm436_vm5, %vm437_vm4 }
 0x1b6   : > { %v432_v52 = vmul.f32 %v1967_v50, %v431_v51 }
 0x1b8   : > { %v433_v53 = vmul.f32 0.5, %v432_v52 }
 0x1ba   : > { %v434_v54 = vsub.f32 1.5, %v433_v53 }
 0x1bc   : > { %v435_v56 = vmul.f32 %v1967_v50, %v434_v54 }
 0x1be   : > { %v439_v58 = vsel %vm438_vm6, %v1967_v50, %v435_v56 }
 0x1bf   : > { %v440_v59 = vmul.f32 %v439_v58, %v423_v44 }
 0x1c1   : > { %v442_v61 = vmul.f32 %v441_v57, %v440_v59 }
 0x1c3   : > { %v2289_v62 = vadd.f32 %v443_v60, %v442_v61 }
 0x1c5   : > { %v454_v63 = vsel %vm411_vm2, %v2289_v62, 0.0 }
 0x1c6   : > { %455 = vadd.xlane.f32.xlu1 %v454_v63 }
 0x239   : > { %v456_v0 = vpop.xlane.xlu1 %455 }
 0x23a   : > { %v457_v1 = vmul.f32 %v456_v0, %v2281_v41 }
 0x23c   : > { %v458_v2 = vsub.f32 %v2289_v62, %v457_v1 }
 0x23e   : > { %v459_v3 = vmul.f32 %v458_v2, %v458_v2 }
 0x240   : > { %v460_v4 = vsel %vm411_vm2, %v459_v3, 0.0 }
 0x241   : > { %461 = vadd.xlane.f32.xlu1 %v460_v4 }
 0x2b4   : > { %v462_v11 = vpop.xlane.xlu1 %461 }
 0x2b5   : > { %v463_v12 = vmul.f32 %v462_v11, %v2281_v41 }
 0x2b7   : > { %v464_v13 = vadd.f32 1e-05, %v463_v12 }
 0x2b9   : > { %1968 = vrsqrt.f32 %v464_v13  ;;  %vm471_vm8 = vweird.f32 %v464_v13 }
 0x2bf   : > { %v1969_v14 = vpop.eup %1968 }
 0x2c0   : > { %v466_v15 = vmul.f32 %v1969_v14, %v464_v13  ;;  %vm472_vm7 = vweird.f32 %v1969_v14 }
 0x2c1   : > { %vm473_vm9 = vmor %vm471_vm8, %vm472_vm7 }
 0x2c2   : > { %v467_v16 = vmul.f32 %v1969_v14, %v466_v15 }
 0x2c4   : > { %v468_v17 = vmul.f32 0.5, %v467_v16 }
 0x2c6   : > { %v469_v18 = vsub.f32 1.5, %v468_v17 }
 0x2c8   : > { %v470_v20 = vmul.f32 %v1969_v14, %v469_v18 }
 0x2ca   : > { %v474_v22 = vsel %vm473_vm9, %v1969_v14, %v470_v20 }
 0x2cb   : > { %v475_v23 = vmul.f32 %v474_v22, %v458_v2 }
 0x2cd   : > { %v477_v25 = vmul.f32 %v476_v21, %v475_v23 }
 0x2cf   : > { %v479_v26 = vadd.f32 %v478_v24, %v477_v25 }
 0x2d1   : > { %1817 = vmatmul.msk.f32.vlgmr.msra.gmra.mxu2 %vm481_vm10, %v479_v26 }
 0x354   : > { %v502_v28 = vpop.f32.mrf.mxu2 }
 0x355   : > { %v2334_v29 = vadd.f32 %v502_v28, %v480_v27 }
 0x357   : > { %546 = vrot.lane.b32.xlu1 %v2334_v29, %s2994_s22  ;;  %506 = vrot.lane.b32.xlu2 %v2334_v29, %s2087_s24  ;;  %s3007_s22 = smov 32  }
 0x35f   : > { %575 = vrot.lane.b32.xlu1 %v2334_v29, %s2088_s25 }
 0x3b1   : > { %v507_v30 = vpop.permute.xlu2 %506 }
 0x3b2   : > { %1818 = vmatpush.xpose.msk.msrb.mxu1 %vm508_vm11, %v507_v30 }
 0x3b5   : > { %1819 = vmatmul.msk.f32.vlgmr.msrb.gmra.mxu1 %vm508_vm11, %v2334_v29 }
 0x3c9   : > { %v547_v31 = vpop.permute.xlu1 %546 }
 0x3ca   : > { %1820 = vmatpush.msk.msrb.mxu2 %vm552_vm12, %v547_v31 }
 0x3d1   : > { %v576_v48 = vpop.permute.xlu1 %575 }
 0x432   : > { %v530_v32 = vpop.f32.mrf.mxu1 }
 0x433   : > { %v533_v33 = vmul.f32 0.35355338, %v530_v32 }
 0x435   : > { %v535_v34 = vsel %vm534_vm13, %v533_v33, -inf }
 0x436   : > { %536 = vmax.xlane.f32.xlu2 %v535_v34 }
 0x44e   : > { %615 = vrot.lane.b32.xlu2 %v2334_v29, %s2992_s26  ;;  %s3009_s26 = smov 16  }
 0x456   : > { %644 = vrot.lane.b32.xlu2 %v2334_v29, %s2989_s29 }
 0x45e   : > { %711 = vrot.lane.b32.xlu2 %v2334_v29, %s2993_s28  ;;  %s3008_s28 = smov 24  }
 0x466   : > { %709 = vrot.lane.b32.xlu2 %v2334_v29, %s2991_s14  ;;  %s2998_s14 = smov 64  }
 0x4a9   : > { %v537_v35 = vpop.xlane.xlu2 %536 }
 0x4aa   : > { %v538_v36 = vsub.f32 %v533_v33, %v537_v35 }
 0x4ac   : > { %v539_v37 = vmul.f32 1.442695, %v538_v36 }
 0x4ae   : > { %1970 = vpow2.f32 %v539_v37 }
 0x4b1   : > { %v616_v38 = vpop.permute.xlu2 %615 }
 0x4b2   : > { %1824 = vmatpush.msk.msra.mxu3 %vm552_vm12, %v616_v38 }
 0x4b4   : > { %v1971_v39 = vpop.eup %1970 }
 0x4b5   : > { %v541_v40 = vsel %vm534_vm13, %v1971_v39, 0.0 }
 0x4b6   : > { %542 = vadd.xlane.f32.xlu0 %v541_v40  ;;  %v793_v40 = vperm.slane %v2328_v19, 3 }
 0x4b9   : > { %v645_v42 = vpop.permute.xlu2 %644 }
 0x4ba   : > { %1826 = vmatpush.xpose.msk.msra.mxu1 %vm508_vm11, %v645_v42 }
 0x4c1   : > { %v712_v43 = vpop.permute.xlu2 %711 }
 0x4c2   : > { %1830 = vmatpush.xpose.msk.msrb.mxu3 %vm508_vm11, %v712_v43 }
 0x4c9   : > { %v710_v63 = vpop.permute.xlu2 %709 }
 0x4ca   : > { %577 = vrot.lane.b32.xlu0 %v2334_v29, %s2093_s16 }
 0x529   : > { %v543_v44 = vpop.xlane.xlu0 %542 }
 0x52a   : > { %1972 = vrcp.f32 %v543_v44 }
 0x530   : > { %v1973_v45 = vpop.eup %1972 }
 0x531   : > { %v545_v46 = vmul.f32 %v1973_v45, %v1971_v39 }
 0x533   : > { %1821 = vmatmul.msk.f32.vlgmr.msrb.gmra.mxu2 %vm548_vm14, %v545_v46 }
 0x53c   : > { %v578_v47 = vpop.permute.xlu0 %577 }
 0x53d   : > { %1822 = vmatpush.xpose.msk.msra.mxu2 %vm508_vm11, %v578_v47 }
 0x540   : > { %1823 = vmatmul.msk.f32.vlgmr.msra.gmra.mxu2 %vm508_vm11, %v576_v48 }
 0x5b6   : > { %v2364_v49 = vpop.f32.mrf.mxu2 }
 0x5c3   : > { %v600_v50 = vpop.f32.mrf.mxu2 }
 0x5c4   : > { %v603_v51 = vmul.f32 0.35355338, %v600_v50 }
 0x5c6   : > { %v604_v52 = vsel %vm534_vm13, %v603_v51, -inf }
 0x5c7   : > { %605 = vmax.xlane.f32.xlu0 %v604_v52  ;;  %v449_v52 = vld [vmem:[%s2975_s3 + $0x18] sm:$0xff] }
 0x5db   : > { %642 = vrot.lane.b32.xlu0 %v2334_v29, %s2990_s27  ;;  %s3002_s27 = smov 112  }
 0x63a   : > { %v606_v53 = vpop.xlane.xlu0 %605 }
 0x63b   : > { %v607_v54 = vsub.f32 %v603_v51, %v606_v53  ;;  %v453_v51 = vld [vmem:[%s2975_s3 + $0x38] sm:$0xff]  ;;  %v447_v53 = vld [vmem:[%s2975_s3 + $0x8] sm:$0xff] }
 0x63d   : > { %v608_v55 = vmul.f32 1.442695, %v607_v54 }
 0x63f   : > { %1974 = vpow2.f32 %v608_v55 }
 0x645   : > { %v1975_v56 = vpop.eup %1974 }
 0x646   : > { %v610_v57 = vsel %vm534_vm13, %v1975_v56, 0.0 }
 0x647   : > { %611 = vadd.xlane.f32.xlu1 %v610_v57 }
 0x64d   : > { %v643_v58 = vpop.permute.xlu0 %642 }
 0x64e   : > { %1827 = vmatmul.msk.f32.vlgmr.msra.gmra.mxu1 %vm508_vm11, %v643_v58 }
 0x6ba   : > { %v612_v59 = vpop.xlane.xlu1 %611 }
 0x6bb   : > { %1976 = vrcp.f32 %v612_v59 }
 0x6c1   : > { %v1977_v60 = vpop.eup %1976 }
 0x6c2   : > { %v614_v61 = vmul.f32 %v1977_v60, %v1975_v56 }
 0x6c4   : > { %1825 = vmatmul.msk.f32.vlgmr.msra.gmra.mxu3 %vm548_vm14, %v614_v61 }
 0x6c5   : > { %876 = vmatpush.msra.mxu3 %v453_v51 }
 0x6cb   : > { %v667_v0 = vpop.f32.mrf.mxu1 }
 0x6cc   : > { %v670_v1 = vmul.f32 0.35355338, %v667_v0  ;;  %1831 = vmatmul.msk.f32.vlgmr.msrb.gmra.mxu3 %vm508_vm11, %v710_v63  ;;  %v856_v0 = vperm.slane %v2328_v19, 4 }
 0x6ce   : > { %v671_v2 = vsel %vm534_vm13, %v670_v1, -inf }
 0x6cf   : > { %672 = vmax.xlane.f32.xlu1 %v671_v2 }
 0x742   : > { %v673_v3 = vpop.xlane.xlu1 %672 }
 0x743   : > { %v674_v4 = vsub.f32 %v670_v1, %v673_v3  ;;  %v858_v3 = vperm.slane %v2328_v19, 5 }
 0x745   : > { %v675_v11 = vmul.f32 1.442695, %v674_v4 }
 0x747   : > { %1978 = vpow2.f32 %v675_v11  ;;  %v639_v12 = vpop.f32.mrf.mxu3 }
 0x74d   : > { %v1979_v13 = vpop.eup %1978 }
 0x74e   : > { %v677_v14 = vsel %vm534_vm13, %v1979_v13, 0.0 }
 0x74f   : > { %678 = vadd.xlane.f32.xlu1 %v677_v14  ;;  %v734_v15 = vpop.f32.mrf.mxu3  ;;  %v918_v14 = vld [vmem:[%s2976_s4 + $0x68] sm:$0xff] }
 0x750   : > { %v737_v16 = vmul.f32 0.35355338, %v734_v15  ;;  %v917_v15 = vld [vmem:[%s2976_s4 + $0x60] sm:$0xff] }
 0x752   : > { %v738_v17 = vsel %vm534_vm13, %v737_v16, -inf }
 0x753   : > { %739 = vmax.xlane.f32.xlu2 %v738_v17  ;;  %v915_v17 = vld [vmem:[%s2976_s4 + $0x50] sm:$0xff] }
 0x768   : > { %682 = vrot.lane.b32.xlu1 %v2334_v29, %s2988_s17  ;;  %s3003_s17 = smov 80  }
 0x76b   : > { %1945 = vrot.lane.b32.xlu2 %v1944_v9, %s2983_s18 }
 0x770   : > { %749 = vrot.lane.b32.xlu1 %v2334_v29, %s2982_s21  ;;  %s2985_s21 = smov 16  }
 0x778   : > { %777 = vrot.lane.b32.xlu1 %v639_v12, %s2987_s23  ;;  %v920_v12 = vld [vmem:[%s2976_s4 + $0x78] sm:$0xff]  ;;  %s3005_s23 = smov 8  }
 0x779   : > { %922 = vmatpush.msrb.mxu0 %v920_v12 }
 0x7c2   : > { %v679_v22 = vpop.xlane.xlu1 %678 }
 0x7c6   : > { %v740_v18 = vpop.xlane.xlu2 %739 }
 0x7c7   : > { %v741_v20 = vsub.f32 %v737_v16, %v740_v18  ;;  %v916_v16 = vld [vmem:[%s2976_s4 + $0x58] sm:$0xff]  ;;  %v914_v18 = vld [vmem:[%s2976_s4 + $0x48] sm:$0xff] }
 0x7c9   : > { %v742_v21 = vmul.f32 1.442695, %v741_v20  ;;  %v913_v20 = vld [vmem:[%s2976_s4 + $0x40] sm:$0xff] }
 0x7cb   : > { %1980 = vpow2.f32 %v742_v21  ;;  %v912_v21 = vld [vmem:[%s2976_s4 + $0x38] sm:$0xff] }
 0x7cc   : > { %1982 = vrcp.f32 %v679_v22  ;;  %v911_v22 = vld [vmem:[%s2976_s4 + $0x30] sm:$0xff] }
 0x7ce   : > { %v1946_v5 = vpop.permute.xlu2 %1945 }
 0x7cf   : > { %v1948_v9 = vunpack.i.h.bf16 %v1946_v5  ;;  %v1947_v33 = vunpack.i.l.bf16 %v1946_v5 }
 0x7d1   : > { %v1981_v23 = vpop.eup %1980 }
 0x7d2   : > { %v744_v24 = vsel %vm534_vm13, %v1981_v23, 0.0  ;;  %v1983_v25 = vpop.eup %1982 }
 0x7d3   : > { %745 = vadd.xlane.f32.xlu0 %v744_v24  ;;  %v681_v26 = vmul.f32 %v1983_v25, %v1979_v13  ;;  %v919_v13 = vld [vmem:[%s2976_s4 + $0x70] sm:$0xff]  ;;  %v909_v24 = vld [vmem:[%s2976_s4 + $0x20] sm:$0xff]  ;;  %v908_v25 = vld [vmem:[%s2976_s4 + $0x18] sm:$0xff] }
 0x7d4   : > { %923 = vmatpush.msrb.mxu0 %v919_v13 }
 0x7d6   : > { %924 = vmatpush.msrb.mxu0 %v918_v14 }
 0x7d8   : > { %925 = vmatpush.msrb.mxu0 %v917_v15 }
 0x7da   : > { %v683_v27 = vpop.permute.xlu1 %682  ;;  %926 = vmatpush.msrb.mxu0 %v916_v16 }
 0x7db   : > { %1828 = vmatpush.msk.msrb.mxu2 %vm552_vm12, %v683_v27  ;;  %v907_v27 = vld [vmem:[%s2976_s4 + $0x10] sm:$0xff] }
 0x7dc   : > { %1829 = vmatmul.msk.f32.vlgmr.msrb.gmra.mxu2 %vm548_vm14, %v681_v26  ;;  %927 = vmatpush.msrb.mxu0 %v915_v17  ;;  %v860_v26 = vperm.slane %v2328_v19, 6 }
 0x7dd   : > { %825 = vmatpush.msra.mxu2 %v1947_v33 }
 0x7de   : > { %928 = vmatpush.msrb.mxu0 %v914_v18 }
 0x7df   : > { %826 = vmatpush.msra.mxu2 %v1948_v9 }
 0x7e0   : > { %929 = vmatpush.msrb.mxu0 %v913_v20 }
 0x7e2   : > { %v750_v28 = vpop.permute.xlu1 %749  ;;  %930 = vmatpush.msrb.mxu0 %v912_v21 }
 0x7e3   : > { %1832 = vmatpush.msk.msrb.mxu1 %vm552_vm12, %v750_v28  ;;  %v906_v28 = vld [vmem:[%s2976_s4 + $0x8] sm:$0xff] }
 0x7e4   : > { %931 = vmatpush.msrb.mxu0 %v911_v22 }
 0x7e7   : > { %1950 = vrot.lane.b32.xlu0 %v1949_v10, %s2983_s18  ;;  %s2986_s18 = smov 24  }
 0x7ea   : > { %v778_v8 = vpop.permute.xlu1 %777 }
 0x7eb   : > { %v788_v36 = vsel %vm508_vm11, %v2364_v49, %v778_v8 }
 0x846   : > { %v746_v29 = vpop.xlane.xlu0 %745 }
 0x847   : > { %1984 = vrcp.f32 %v746_v29 }
 0x84d   : > { %v1985_v30 = vpop.eup %1984 }
 0x84e   : > { %v748_v31 = vmul.f32 %v1985_v30, %v1981_v23  ;;  %v910_v23 = vld [vmem:[%s2976_s4 + $0x28] sm:$0xff] }
 0x84f   : > { %932 = vmatpush.msrb.mxu0 %v910_v23 }
 0x850   : > { %1833 = vmatmul.msk.f32.vlgmr.msrb.gmra.mxu1 %vm548_vm14, %v748_v31  ;;  %v905_v31 = vld [vmem:[%s2976_s4] sm:$0xff] }
 0x851   : > { %933 = vmatpush.msrb.mxu0 %v909_v24 }
 0x853   : > { %934 = vmatpush.msrb.mxu0 %v908_v25 }
 0x855   : > { %935 = vmatpush.msrb.mxu0 %v907_v27 }
 0x857   : > { %936 = vmatpush.msrb.mxu0 %v906_v28 }
 0x859   : > { %v1951_v6 = vpop.permute.xlu0 %1950  ;;  %937 = vmatpush.msrb.mxu0 %v905_v31 }
 0x85a   : > { %v1952_v34 = vunpack.i.l.bf16 %v1951_v6  ;;  %v1953_v35 = vunpack.i.h.bf16 %v1951_v6 }
 0x85c   : > { %827 = vmatpush.msra.mxu2 %v1952_v34 }
 0x85e   : > { %828 = vmatpush.msra.mxu2 %v1953_v35 }
 0x85f   : > { %v706_v32 = vpop.f32.mrf.mxu2 }
 0x860   : > { %781 = vrot.lane.b32.xlu1 %v706_v32, %s2985_s21  ;;  %s3004_s21 = smov 48  }
 0x8cd   : > { %v773_v7 = vpop.f32.mrf.mxu1 }
 0x8ce   : > { %785 = vrot.lane.b32.xlu1 %v773_v7, %s2986_s18  ;;  %s3006_s18 = smov 40  }
 0x8d2   : > { %v782_v10 = vpop.permute.xlu1 %781 }
 0x8d3   : > { %v790_v37 = vsel %vm789_vm15, %v788_v36, %v782_v10 }
 0x940   : > { %v786_v38 = vpop.permute.xlu1 %785 }
 0x941   : > { %v792_v39 = vsel %vm791_vm0, %v790_v37, %v786_v38 }
 0x942   : > { %1834 = vmatmul.msk.f32.vlgmr.msra.gmra.mxu2 %vm481_vm10, %v792_v39 }
 0x9c5   : > { %v830_v42 = vpop.f32.mrf.mxu2 }
 0x9c6   : > { %v831_v43 = vadd.f32 %v830_v42, %v793_v40  ;;  %v921_v42 = vperm.slane %v2328_v19, 7  ;;  %v2487_v19 = vld [vmem:[%s2975_s3 + $0x70] sm:$0xff] }
 0x9c7   : > { %996 = vmatpush.msra.mxu1 %v2487_v19 }
 0x9c8   : > { %v2403_v44 = vadd.f32 %v831_v43, %v2289_v62  ;;  %v451_v62 = vld [vmem:[%s2975_s3 + $0x28] sm:$0xff] }
 0x9c9   : > { %877 = vmatpush.msra.mxu3 %v451_v62 }
 0x9ca   : > { %v834_v45 = vsel %vm411_vm2, %v2403_v44, 0.0 }
 0x9cb   : > { %835 = vadd.xlane.f32.xlu2 %v834_v45  ;;  %878 = vmatpush.msra.mxu3 %v449_v52 }
 0x9cd   : > { %879 = vmatpush.msra.mxu3 %v447_v53  ;;  %v2501_v53 = vld [vmem:[%s2975_s3 + $0x50] sm:$0xff] }
 0xa3e   : > { %v836_v46 = vpop.xlane.xlu2 %835 }
 0xa3f   : > { %v837_v47 = vmul.f32 %v836_v46, %v2281_v41 }
 0xa41   : > { %v838_v48 = vsub.f32 %v2403_v44, %v837_v47 }
 0xa43   : > { %v839_v49 = vmul.f32 %v838_v48, %v838_v48 }
 0xa45   : > { %v840_v50 = vsel %vm411_vm2, %v839_v49, 0.0 }
 0xa46   : > { %841 = vadd.xlane.f32.xlu1 %v840_v50 }
 0xab9   : > { %v842_v54 = vpop.xlane.xlu1 %841 }
 0xaba   : > { %v843_v55 = vmul.f32 %v842_v54, %v2281_v41  ;;  %v2506_v54 = vld [vmem:[%s2975_s3 + $0x40] sm:$0xff] }
 0xabc   : > { %v844_v56 = vadd.f32 1e-05, %v843_v55  ;;  %v1959_v55 = vpack.i.bf16 %v2506_v54, %v2501_v53 }
 0xabe   : > { %1986 = vrsqrt.f32 %v844_v56  ;;  %vm851_vm4 = vweird.f32 %v844_v56 }
 0xac4   : > { %v1987_v57 = vpop.eup %1986 }
 0xac5   : > { %v846_v58 = vmul.f32 %v1987_v57, %v844_v56  ;;  %vm852_vm3 = vweird.f32 %v1987_v57 }
 0xac6   : > { %vm853_vm5 = vmor %vm851_vm4, %vm852_vm3 }
 0xac7   : > { %v847_v59 = vmul.f32 %v1987_v57, %v846_v58 }
 0xac9   : > { %v848_v60 = vmul.f32 0.5, %v847_v59 }
 0xacb   : > { %v849_v61 = vsub.f32 1.5, %v848_v60 }
 0xacd   : > { %v850_v63 = vmul.f32 %v1987_v57, %v849_v61 }
 0xacf   : > { %v854_v1 = vsel %vm853_vm5, %v1987_v57, %v850_v63 }
 0xad0   : > { %v855_v2 = vmul.f32 %v854_v1, %v838_v48 }
 0xad2   : > { %v857_v4 = vmul.f32 %v856_v0, %v855_v2  ;;  %v2516_v0 = vld [vmem:[%s2977_s5 + $0x8] sm:$0xff] }
 0xad3   : > { %v978_v12 = vperm.slane %v2516_v0, 1  ;;  %v980_v15 = vperm.slane %v2516_v0, 2 }
 0xad4   : > { %v859_v11 = vadd.f32 %v858_v3, %v857_v4  ;;  %v976_v3 = vperm.slane %v2516_v0, 0 }
 0xad6   : > { %1835 = vmatmul.msk.f32.vlgmr.msra.gmra.mxu3 %vm481_vm10, %v859_v11 }
 0xb59   : > { %v881_v29 = vpop.f32.mrf.mxu3 }
 0xb5a   : > { %v882_v30 = vadd.f32 %v881_v29, %v860_v26 }
 0xb5c   : > { %v1836_v32 = vmul.f32 -1.702, %v882_v30 }
 0xb5e   : > { %v886_v5 = vmul.f32 1.442695, %v1836_v32 }
 0xb60   : > { %1988 = vpow2.f32 %v886_v5 }
 0xb66   : > { %v1989_v6 = vpop.eup %1988 }
 0xb67   : > { %v888_v9 = vadd.f32 1.0, %v1989_v6 }
 0xb69   : > { %1990 = vrcp.f32 %v888_v9  ;;  %v900_v7 = vand.u32 2147483648, %v888_v9  ;;  %v898_v10 = vand.u32 2147483647, %v888_v9  ;;  %vm894_vm7 = vweird.f32 %v888_v9 }
 0xb6b   : > { %v901_v37 = vor.u32 1.1754944e-38, %v900_v7  ;;  %vm899_vm9 = vcmp.eq.f32.partialorder %v898_v10, 8.507059e+37 }
 0xb6f   : > { %v1991_v33 = vpop.eup %1990 }
 0xb70   : > { %v890_v34 = vmul.f32 %v1991_v33, %v888_v9  ;;  %vm895_vm6 = vweird.f32 %v1991_v33 }
 0xb71   : > { %vm896_vm8 = vmor %vm894_vm7, %vm895_vm6  ;;  %vm1437_vm6 = vcmask 253952  }
 0xb72   : > { %v891_v35 = vsub.f32 1.0, %v890_v34 }
 0xb74   : > { %v892_v8 = vmul.f32 %v1991_v33, %v891_v35 }
 0xb76   : > { %v893_v36 = vadd.f32 %v1991_v33, %v892_v8 }
 0xb78   : > { %v897_v38 = vsel %vm896_vm8, %v1991_v33, %v893_v36 }
 0xb79   : > { %v902_v39 = vsel %vm899_vm9, %v901_v37, %v897_v38 }
 0xb7a   : > { %v904_v40 = vmul.f32 %v902_v39, %v882_v30 }
 0xb7c   : > { %938 = vmatmul.f32.vlgmr.msrb.gmra.mxu0 %v904_v40 }
 0xbf9   : > { %v939_v43 = vpop.f32.mrf.mxu0 }
 0xbfa   : > { %v940_v45 = vadd.f32 %v939_v43, %v921_v42 }
 0xbfc   : > { %v2477_v46 = vadd.f32 %v940_v45, %v2403_v44  ;;  %v2493_v44 = vld [vmem:[%s2975_s3 + $0x60] sm:$0xff] }
 0xbfd   : > { %997 = vmatpush.msra.mxu1 %v2493_v44  ;;  %v1954_v52 = vpack.i.bf16 %v2493_v44, %v2487_v19 }
 0xbfe   : > { %v954_v47 = vsel %vm411_vm2, %v2477_v46, 0.0 }
 0xbff   : > { %955 = vadd.xlane.f32.xlu0 %v954_v47  ;;  %998 = vmatpush.msra.mxu1 %v2501_v53 }
 0xc01   : > { %999 = vmatpush.msra.mxu1 %v2506_v54 }
 0xc72   : > { %v956_v48 = vpop.xlane.xlu0 %955 }
 0xc73   : > { %v957_v49 = vmul.f32 %v956_v48, %v2281_v41 }
 0xc75   : > { %v958_v50 = vsub.f32 %v2477_v46, %v957_v49 }
 0xc77   : > { %v959_v51 = vmul.f32 %v958_v50, %v958_v50 }
 0xc79   : > { %v960_v62 = vsel %vm411_vm2, %v959_v51, 0.0 }
 0xc7a   : > { %961 = vadd.xlane.f32.xlu2 %v960_v62 }
 0xced   : > { %v962_v56 = vpop.xlane.xlu2 %961 }
 0xcee   : > { %v963_v57 = vmul.f32 %v962_v56, %v2281_v41 }
 0xcf0   : > { %v964_v58 = vadd.f32 1e-05, %v963_v57 }
 0xcf2   : > { %1992 = vrsqrt.f32 %v964_v58  ;;  %vm971_vm4 = vweird.f32 %v964_v58 }
 0xcf8   : > { %v1993_v59 = vpop.eup %1992 }
 0xcf9   : > { %v966_v60 = vmul.f32 %v1993_v59, %v964_v58  ;;  %vm972_vm3 = vweird.f32 %v1993_v59 }
 0xcfa   : > { %vm973_vm5 = vmor %vm971_vm4, %vm972_vm3  ;;  %vm1740_vm4 = vcmask 73728  }
 0xcfb   : > { %v967_v61 = vmul.f32 %v1993_v59, %v966_v60 }
 0xcfd   : > { %v968_v63 = vmul.f32 0.5, %v967_v61 }
 0xcff   : > { %v969_v1 = vsub.f32 1.5, %v968_v63 }
 0xd01   : > { %v970_v2 = vmul.f32 %v1993_v59, %v969_v1 }
 0xd03   : > { %v974_v4 = vsel %vm973_vm5, %v1993_v59, %v970_v2 }
 0xd04   : > { %v975_v11 = vmul.f32 %v974_v4, %v958_v50 }
 0xd06   : > { %v977_v13 = vmul.f32 %v976_v3, %v975_v11 }
 0xd08   : > { %v979_v14 = vadd.f32 %v978_v12, %v977_v13 }
 0xd0a   : > { %1846 = vmatmul.msk.f32.vlgmr.msra.gmra.mxu1 %vm481_vm10, %v979_v14 }
 0xd87   : > { %v1001_v16 = vpop.f32.mrf.mxu1 }
 0xd88   : > { %v2522_v17 = vadd.f32 %v1001_v16, %v980_v15 }
 0xd8a   : > { %1070 = vrot.lane.b32.xlu2 %v2522_v17, %s2088_s25  ;;  %1072 = vrot.lane.b32.xlu0 %v2522_v17, %s2093_s16  ;;  %s3000_s25 = smov 56   ;;  %s3001_s16 = smov 104  }
 0xd8b   : > { %1005 = vrot.lane.b32.xlu1 %v2522_v17, %s2087_s24  ;;  %s2999_s24 = smov 72  }
 0xd92   : > { %1043 = vrot.lane.b32.xlu2 %v2522_v17, %s2998_s14 }
 0xde4   : > { %v1071_v18 = vpop.permute.xlu2 %1070 }
 0xdec   : > { %v1044_v20 = vpop.permute.xlu2 %1043 }
 0xded   : > { %1849 = vmatpush.msk.msrb.mxu3 %vm552_vm12, %v1044_v20 }
 0xdfc   : > { %v1073_v21 = vpop.permute.xlu0 %1072 }
 0xdfd   : > { %v1006_v22 = vpop.permute.xlu1 %1005  ;;  %1851 = vmatpush.xpose.msk.msrb.mxu1 %vm508_vm11, %v1073_v21 }
 0xdfe   : > { %1847 = vmatpush.xpose.msk.msrb.mxu2 %vm508_vm11, %v1006_v22 }
 0xe00   : > { %1852 = vmatmul.msk.f32.vlgmr.msrb.gmra.mxu1 %vm508_vm11, %v1071_v18 }
 0xe01   : > { %1848 = vmatmul.msk.f32.vlgmr.msrb.gmra.mxu2 %vm508_vm11, %v2522_v17 }
 0xe7d   : > { %v1095_v23 = vpop.f32.mrf.mxu1 }
 0xe7e   : > { %v1098_v24 = vmul.f32 0.35355338, %v1095_v23 }
 0xe80   : > { %v1099_v25 = vsel %vm534_vm13, %v1098_v24, -inf }
 0xe81   : > { %1100 = vmax.xlane.f32.xlu0 %v1099_v25 }
 0xe84   : > { %v1028_v26 = vpop.f32.mrf.mxu2 }
 0xe85   : > { %v1031_v27 = vmul.f32 0.35355338, %v1028_v26 }
 0xe87   : > { %v1032_v28 = vsel %vm534_vm13, %v1031_v27, -inf }
 0xe88   : > { %1033 = vmax.xlane.f32.xlu1 %v1032_v28 }
 0xe95   : > { %1206 = vrot.lane.b32.xlu0 %v2522_v17, %s2999_s24 }
 0xea1   : > { %1110 = vrot.lane.b32.xlu1 %v2522_v17, %s3000_s25 }
 0xea9   : > { %1204 = vrot.lane.b32.xlu1 %v2522_v17, %s3001_s16 }
 0xef4   : > { %v1101_v29 = vpop.xlane.xlu0 %1100 }
 0xef5   : > { %v1102_v30 = vsub.f32 %v1098_v24, %v1101_v29  ;;  %v1286_v29 = vperm.slane %v2516_v0, 3 }
 0xef7   : > { %v1103_v31 = vmul.f32 1.442695, %v1102_v30 }
 0xef9   : > { %1994 = vpow2.f32 %v1103_v31 }
 0xefb   : > { %v1034_v32 = vpop.xlane.xlu1 %1033 }
 0xefc   : > { %v1035_v5 = vsub.f32 %v1031_v27, %v1034_v32 }
 0xefe   : > { %v1036_v6 = vmul.f32 1.442695, %v1035_v5 }
 0xeff   : > { %v1995_v9 = vpop.eup %1994 }
 0xf00   : > { %1996 = vpow2.f32 %v1036_v6  ;;  %v1105_v33 = vsel %vm534_vm13, %v1995_v9, 0.0 }
 0xf01   : > { %1106 = vadd.xlane.f32.xlu2 %v1105_v33 }
 0xf06   : > { %v1997_v34 = vpop.eup %1996 }
 0xf07   : > { %v1038_v35 = vsel %vm534_vm13, %v1997_v34, 0.0  ;;  %v1207_v8 = vpop.permute.xlu0 %1206 }
 0xf08   : > { %1039 = vadd.xlane.f32.xlu0 %v1038_v35 }
 0xf13   : > { %v1111_v7 = vpop.permute.xlu1 %1110 }
 0xf14   : > { %1853 = vmatpush.msk.msra.mxu2 %vm552_vm12, %v1111_v7  ;;  %v1845_v7 = vld [vmem:[%s2975_s3 + $0x78] sm:$0xff] }
 0xf16   : > { %1859 = vmatpush.xpose.msk.msrb.mxu2 %vm508_vm11, %v1207_v8  ;;  %v1841_v8 = vld [vmem:[%s2975_s3 + $0x58] sm:$0xff] }
 0xf19   : > { %1137 = vrot.lane.b32.xlu2 %v2522_v17, %s3002_s27  ;;  %s2041_s27 = scalar_lea.hbm %s2981_s9, 2 }
 0xf1b   : > { %v1205_v42 = vpop.permute.xlu1 %1204 }
 0xf1c   : > { %1139 = vrot.lane.b32.xlu0 %v2522_v17, %s3003_s17 }
 0xf74   : > { %v1107_v10 = vpop.xlane.xlu2 %1106 }
 0xf75   : > { %1998 = vrcp.f32 %v1107_v10  ;;  %v1839_v10 = vld [vmem:[%s2975_s3 + $0x48] sm:$0xff] }
 0xf7b   : > { %v1999_v36 = vpop.eup %1998  ;;  %v1040_v37 = vpop.xlane.xlu0 %1039 }
 0xf7c   : > { %v1109_v38 = vmul.f32 %v1999_v36, %v1995_v9  ;;  %2000 = vrcp.f32 %v1040_v37  ;;  %v1138_v45 = vpop.permute.xlu2 %1137 }
 0xf7e   : > { %1854 = vmatmul.msk.f32.vlgmr.msra.gmra.mxu2 %vm548_vm14, %v1109_v38 }
 0xf7f   : > { %1369 = vmatpush.msra.mxu2 %v1845_v7 }
 0xf82   : > { %v2001_v39 = vpop.eup %2000 }
 0xf83   : > { %v1042_v40 = vmul.f32 %v2001_v39, %v1997_v34 }
 0xf85   : > { %1850 = vmatmul.msk.f32.vlgmr.msrb.gmra.mxu3 %vm548_vm14, %v1042_v40 }
 0xf86   : > { %1860 = vmatmul.msk.f32.vlgmr.msrb.gmra.mxu2 %vm508_vm11, %v1205_v42 }
 0xf8e   : > { %v1140_v43 = vpop.permute.xlu0 %1139 }
 0xf8f   : > { %1855 = vmatpush.xpose.msk.msra.mxu3 %vm508_vm11, %v1140_v43 }
 0xf92   : > { %1856 = vmatmul.msk.f32.vlgmr.msra.gmra.mxu3 %vm508_vm11, %v1138_v45 }
0x1001   : > { %v1134_v47 = vpop.f32.mrf.mxu2 }
0x1008   : > { %v1067_v51 = vpop.f32.mrf.mxu3 }
0x1009   : > { %v1229_v48 = vpop.f32.mrf.mxu2 }
0x100a   : > { %v1232_v49 = vmul.f32 0.35355338, %v1229_v48  ;;  %v1349_v48 = vperm.slane %v2516_v0, 4 }
0x100c   : > { %v1233_v50 = vsel %vm534_vm13, %v1232_v49, -inf }
0x100d   : > { %1234 = vmax.xlane.f32.xlu1 %v1233_v50 }
0x1015   : > { %v1162_v62 = vpop.f32.mrf.mxu3 }
0x1016   : > { %v1165_v56 = vmul.f32 0.35355338, %v1162_v62 }
0x1018   : > { %v1166_v57 = vsel %vm534_vm13, %v1165_v56, -inf }
0x1019   : > { %1167 = vmax.xlane.f32.xlu0 %v1166_v57  ;;  %v1881_v57 = vld [vmem:[%s2976_s4 + $0xf8] sm:$0xff] }
0x102d   : > { %1177 = vrot.lane.b32.xlu0 %v2522_v17, %s3004_s21  ;;  %s323_s21 = sand.u32 1, %s2075_s10  }
0x102e   : > { %s1743_s14 = scalar_lea.sflag [#allocation3], %s323_s21 }
0x1035   : > { %1272 = vrot.lane.b32.xlu0 %v1134_v47, %s3005_s23 }
0x1080   : > { %v1235_v58 = vpop.xlane.xlu1 %1234 }
0x1081   : > { %v1236_v59 = vsub.f32 %v1232_v49, %v1235_v58  ;;  %v1880_v58 = vld [vmem:[%s2976_s4 + $0xf0] sm:$0xff] }
0x1083   : > { %v1237_v60 = vmul.f32 1.442695, %v1236_v59  ;;  %v1879_v59 = vld [vmem:[%s2976_s4 + $0xe8] sm:$0xff] }
0x1085   : > { %2002 = vpow2.f32 %v1237_v60  ;;  %v1878_v60 = vld [vmem:[%s2976_s4 + $0xe0] sm:$0xff] }
0x108b   : > { %v2003_v61 = vpop.eup %2002 }
0x108c   : > { %v1168_v63 = vpop.xlane.xlu0 %1167  ;;  %v1239_v1 = vsel %vm534_vm13, %v2003_v61, 0.0 }
0x108d   : > { %v1169_v2 = vsub.f32 %v1165_v56, %v1168_v63  ;;  %1240 = vadd.xlane.f32.xlu2 %v1239_v1  ;;  %v1876_v63 = vld [vmem:[%s2976_s4 + $0xd0] sm:$0xff]  ;;  %v1875_v1 = vld [vmem:[%s2976_s4 + $0xc8] sm:$0xff] }
0x108f   : > { %v1170_v3 = vmul.f32 1.442695, %v1169_v2  ;;  %v1874_v2 = vld [vmem:[%s2976_s4 + $0xc0] sm:$0xff] }
0x1091   : > { %2004 = vpow2.f32 %v1170_v3  ;;  %v1873_v3 = vld [vmem:[%s2976_s4 + $0xb8] sm:$0xff] }
0x1097   : > { %v2005_v4 = vpop.eup %2004 }
0x1098   : > { %v1172_v11 = vsel %vm534_vm13, %v2005_v4, 0.0 }
0x1099   : > { %1173 = vadd.xlane.f32.xlu1 %v1172_v11  ;;  %v1871_v11 = vld [vmem:[%s2976_s4 + $0xa8] sm:$0xff] }
0x109f   : > { %v1178_v12 = vpop.permute.xlu0 %1177 }
0x10a0   : > { %1857 = vmatpush.msk.msra.mxu1 %vm552_vm12, %v1178_v12  ;;  %v1870_v12 = vld [vmem:[%s2976_s4 + $0xa0] sm:$0xff] }
0x10a5   : > { %1244 = vrot.lane.b32.xlu2 %v2522_v17, %s3006_s18 }
0x10a7   : > { %v1273_v23 = vpop.permute.xlu0 %1272 }
0x10a8   : > { %v1283_v24 = vsel %vm508_vm11, %v1067_v51, %v1273_v23  ;;  %v1351_v51 = vperm.slane %v2516_v0, 5 }
0x10ad   : > { %1960 = vrot.lane.b32.xlu2 %v1959_v55, %s3007_s22 }
0x10b2   : > { %1955 = vrot.lane.b32.xlu1 %v1954_v52, %s3007_s22  ;;  %s1751_s22 = scalar_lea.hbm %s2981_s9, %s2172_s13 }
0x10b3   : > { %s1755_s29 = sshll.u32 %s1751_s22, 4  ;;  %s1756_s29 = int_to_ptr.hbm [resolvable:$true] %s1755_s29 }
0x10b4   : > { %s2035_s24 = sshra.s32 %s1756_s29, 4  ;;  %s2036_s24 = int_to_ptr.hbm [resolvable:$true] %s2035_s24 }
0x10b5   : > { %s2037_s25 = scalar_lea.hbm %s2036_s24, 1  ;;  %p2042_p0 = scmp.lt.s32.totalorder %s2036_s24, %s2981_s9 }
0x10b6   : > { %p2038_p11 = scmp.ne.s32.totalorder %s2036_s24, %s2037_s25  ;;  %p2043_p1 = scmp.lt.s32.totalorder %s2041_s27, %s2037_s25 }
0x10b8   : > { %p2039_p12 = pnand %p2038_p11, %p2189_p5  ;;  %p2044_p2 = por %p2043_p1, %p2042_p0 }
0x10ba   : > { %p2040_p13 = pneg %p2039_p12 }
0x10bc   : > { %p2045_p3 = pnand %p2044_p2, %p2040_p13 }
0x1100   : > { %v1241_v13 = vpop.xlane.xlu2 %1240 }
0x1101   : > { %2006 = vrcp.f32 %v1241_v13  ;;  %v1869_v13 = vld [vmem:[%s2976_s4 + $0x98] sm:$0xff] }
0x1107   : > { %v2007_v14 = vpop.eup %2006 }
0x1108   : > { %v1243_v15 = vmul.f32 %v2007_v14, %v2003_v61  ;;  %v1245_v16 = vpop.permute.xlu2 %1244  ;;  %v1877_v61 = vld [vmem:[%s2976_s4 + $0xd8] sm:$0xff]  ;;  %v1353_v14 = vperm.slane %v2516_v0, 6 }
0x1109   : > { %1861 = vmatpush.msk.msrb.mxu3 %vm552_vm12, %v1245_v16  ;;  %v1867_v16 = vld [vmem:[%s2976_s4 + $0x88] sm:$0xff] }
0x110a   : > { %1862 = vmatmul.msk.f32.vlgmr.msrb.gmra.mxu3 %vm548_vm14, %v1243_v15  ;;  %v1868_v15 = vld [vmem:[%s2976_s4 + $0x90] sm:$0xff] }
0x110b   : > { %1416 = vmatpush.msra.mxu3 %v1881_v57 }
0x110c   : > { %v1174_v17 = vpop.xlane.xlu1 %1173 }
0x110d   : > { %2008 = vrcp.f32 %v1174_v17  ;;  %1417 = vmatpush.msra.mxu3 %v1880_v58 }
0x110f   : > { %1418 = vmatpush.msra.mxu3 %v1879_v59 }
0x1110   : > { %v1961_v52 = vpop.permute.xlu2 %1960 }
0x1111   : > { %v1963_v21 = vunpack.i.h.bf16 %v1961_v52  ;;  %v1962_v22 = vunpack.i.l.bf16 %v1961_v52  ;;  %1419 = vmatpush.msra.mxu3 %v1878_v60 }
0x1113   : > { %v2009_v18 = vpop.eup %2008  ;;  %1420 = vmatpush.msra.mxu3 %v1877_v61 }
0x1114   : > { %v1176_v20 = vmul.f32 %v2009_v18, %v2005_v4  ;;  %v1872_v4 = vld [vmem:[%s2976_s4 + $0xb0] sm:$0xff] }
0x1115   : > { %1421 = vmatpush.msra.mxu3 %v1876_v63 }
0x1116   : > { %1858 = vmatmul.msk.f32.vlgmr.msra.gmra.mxu1 %vm548_vm14, %v1176_v20  ;;  %v1866_v20 = vld [vmem:[%s2976_s4 + $0x80] sm:$0xff] }
0x1117   : > { %1422 = vmatpush.msra.mxu3 %v1875_v1 }
0x1119   : > { %1423 = vmatpush.msra.mxu3 %v1874_v2 }
0x111b   : > { %1424 = vmatpush.msra.mxu3 %v1873_v3 }
0x111d   : > { %1425 = vmatpush.msra.mxu3 %v1872_v4 }
0x111f   : > { %1426 = vmatpush.msra.mxu3 %v1871_v11 }
0x1121   : > { %1427 = vmatpush.msra.mxu3 %v1870_v12 }
0x1123   : > { %1428 = vmatpush.msra.mxu3 %v1869_v13  ;;  %v1609_v13 = vld [vmem:[%s2980_s8 + $0x78] sm:$0xff] }
0x1124   : > { %v1956_v53 = vpop.permute.xlu1 %1955 }
0x1125   : > { %v1958_v54 = vunpack.i.h.bf16 %v1956_v53  ;;  %v1957_v55 = vunpack.i.l.bf16 %v1956_v53  ;;  %1429 = vmatpush.msra.mxu3 %v1868_v15  ;;  %v1641_v15 = vld [vmem:[%s2980_s8 + $0x178] sm:$0xff] }
0x1127   : > { %1318 = vmatpush.msrb.mxu1 %v1957_v55  ;;  %1430 = vmatpush.msra.mxu3 %v1867_v16  ;;  %v1657_v16 = vld [vmem:[%s2980_s8 + $0x1f8] sm:$0xff] }
0x1129   : > { %1319 = vmatpush.msrb.mxu1 %v1958_v54  ;;  %1431 = vmatpush.msra.mxu3 %v1866_v20  ;;  %v1640_v20 = vld [vmem:[%s2980_s8 + $0x170] sm:$0xff] }
0x112b   : > { %1320 = vmatpush.msrb.mxu1 %v1962_v22  ;;  %1720 = vmatpush.msrb.mxu3 %v1657_v16  ;;  %v1645_v16 = vld [vmem:[%s2980_s8 + $0x198] sm:$0xff] }
0x112d   : > { %1321 = vmatpush.msrb.mxu1 %v1963_v21 }
0x118d   : > { %v1268_v19 = vpop.f32.mrf.mxu3 }
0x118e   : > { %1280 = vrot.lane.b32.xlu1 %v1268_v19, %s3008_s28  ;;  %s324_s28 = scalar_lea.vmem [#allocation2], %s323_s21 }
0x1193   : > { %v1201_v44 = vpop.f32.mrf.mxu1 }
0x1194   : > { %1276 = vrot.lane.b32.xlu0 %v1201_v44, %s3009_s26  ;;  %s1753_s26 = sshll.u32 %s324_s28, 4  ;;  %s1754_s26 = int_to_ptr.vmem [resolvable:$true] %s1753_s26 }
0x1200   : > { %v1281_v26 = vpop.permute.xlu1 %1280 }
0x1206   : > { %v1277_v25 = vpop.permute.xlu0 %1276 }
0x1207   : > { %v1284_v27 = vsel %vm789_vm15, %v1283_v24, %v1277_v25 }
0x1208   : > { %v1285_v28 = vsel %vm791_vm0, %v1284_v27, %v1281_v26 }
0x1209   : > { %1863 = vmatmul.msk.f32.vlgmr.msrb.gmra.mxu1 %vm481_vm10, %v1285_v28 }
0x1286   : > { %v1323_v30 = vpop.f32.mrf.mxu1 }
0x1287   : > { %v1324_v31 = vadd.f32 %v1323_v30, %v1286_v29  ;;  %v1415_v30 = vperm.slane %v2516_v0, 7  ;;  %v1480_v0 = vld [vmem:[%s2979_s7 + $0x68] sm:$0xff] }
0x1288   : > { %1518 = vmatpush.msra.mxu1 %v1480_v0 }
0x1289   : > { %v2588_v32 = vadd.f32 %v1324_v31, %v2477_v46  ;;  %v1843_v46 = vld [vmem:[%s2975_s3 + $0x68] sm:$0xff] }
0x128a   : > { %1370 = vmatpush.msra.mxu2 %v1843_v46 }
0x128b   : > { %v1327_v5 = vsel %vm411_vm2, %v2588_v32, 0.0 }
0x128c   : > { %1328 = vadd.xlane.f32.xlu2 %v1327_v5  ;;  %1371 = vmatpush.msra.mxu2 %v1841_v8  ;;  %v1479_v8 = vld [vmem:[%s2979_s7 + $0x60] sm:$0xff] }
0x128d   : > { %1498 = vmatpush.msra.mxu0 %v1479_v8 }
0x128e   : > { %1372 = vmatpush.msra.mxu2 %v1839_v10  ;;  %v1475_v10 = vld [vmem:[%s2979_s7 + $0x40] sm:$0xff] }
0x128f   : > { %1499 = vmatpush.msra.mxu0 %v1475_v10  ;;  %v1604_v10 = vld [vmem:[%s2980_s8 + $0x50] sm:$0xff] }
0x12ff   : > { %v1329_v6 = vpop.xlane.xlu2 %1328 }
0x1300   : > { %v1330_v9 = vmul.f32 %v1329_v6, %v2281_v41 }
0x1302   : > { %v1331_v33 = vsub.f32 %v2588_v32, %v1330_v9 }
0x1304   : > { %v1332_v34 = vmul.f32 %v1331_v33, %v1331_v33 }
0x1306   : > { %v1333_v35 = vsel %vm411_vm2, %v1332_v34, 0.0 }
0x1307   : > { %1334 = vadd.xlane.f32.xlu0 %v1333_v35 }
0x137a   : > { %v1335_v36 = vpop.xlane.xlu0 %1334 }
0x137b   : > { %v1336_v37 = vmul.f32 %v1335_v36, %v2281_v41  ;;  %v1476_v36 = vld [vmem:[%s2979_s7 + $0x48] sm:$0xff] }
0x137c   : > { %1519 = vmatpush.msra.mxu1 %v1476_v36  ;;  %v1620_v36 = vld [vmem:[%s2980_s8 + $0xd0] sm:$0xff] }
0x137d   : > { %v1337_v38 = vadd.f32 1e-05, %v1336_v37  ;;  %v1477_v37 = vld [vmem:[%s2979_s7 + $0x50] sm:$0xff] }
0x137f   : > { %2010 = vrsqrt.f32 %v1337_v38  ;;  %vm1344_vm11 = vweird.f32 %v1337_v38 }
0x1385   : > { %v2011_v39 = vpop.eup %2010 }
0x1386   : > { %v1339_v40 = vmul.f32 %v2011_v39, %v1337_v38  ;;  %vm1345_vm2 = vweird.f32 %v2011_v39  ;;  %v1471_v38 = vld [vmem:[%s2979_s7 + $0x20] sm:$0xff] }
0x1387   : > { %vm1346_vm12 = vmor %vm1344_vm11, %vm1345_vm2  ;;  %1500 = vmatpush.msra.mxu0 %v1471_v38  ;;  %v1652_v38 = vld [vmem:[%s2980_s8 + $0x1d0] sm:$0xff] }
0x1388   : > { %v1340_v42 = vmul.f32 %v2011_v39, %v1339_v40  ;;  %v1473_v40 = vld [vmem:[%s2979_s7 + $0x30] sm:$0xff] }
0x138a   : > { %v1341_v43 = vmul.f32 0.5, %v1340_v42  ;;  %v1467_v42 = vld [vmem:[%s2979_s7] sm:$0xff] }
0x138b   : > { %1501 = vmatpush.msra.mxu0 %v1467_v42  ;;  %v1635_v42 = vld [vmem:[%s2980_s8 + $0x148] sm:$0xff] }
0x138c   : > { %v1342_v45 = vsub.f32 1.5, %v1341_v43  ;;  %v1468_v43 = vld [vmem:[%s2979_s7 + $0x8] sm:$0xff] }
0x138e   : > { %v1343_v47 = vmul.f32 %v2011_v39, %v1342_v45  ;;  %v1469_v45 = vld [vmem:[%s2979_s7 + $0x10] sm:$0xff] }
0x1390   : > { %v1347_v49 = vsel %vm1346_vm12, %v2011_v39, %v1343_v47  ;;  %v1472_v39 = vld [vmem:[%s2979_s7 + $0x28] sm:$0xff]  ;;  %v1482_v47 = vld [vmem:[%s2979_s7 + $0x78] sm:$0xff] }
0x1391   : > { %v1348_v50 = vmul.f32 %v1347_v49, %v1331_v33  ;;  %1520 = vmatpush.msra.mxu1 %v1472_v39  ;;  %1558 = vmatpush.msrb.mxu0 %v1482_v47  ;;  %v1603_v39 = vld [vmem:[%s2980_s8 + $0x48] sm:$0xff]  ;;  %v1618_v47 = vld [vmem:[%s2980_s8 + $0xc0] sm:$0xff] }
0x1393   : > { %v1350_v62 = vmul.f32 %v1349_v48, %v1348_v50  ;;  %1521 = vmatpush.msra.mxu1 %v1468_v43  ;;  %v1478_v48 = vld [vmem:[%s2979_s7 + $0x58] sm:$0xff]  ;;  %v1651_v43 = vld [vmem:[%s2980_s8 + $0x1c8] sm:$0xff] }
0x1394   : > { %v1474_v50 = vld [vmem:[%s2979_s7 + $0x38] sm:$0xff]  ;;  %1559 = vmatpush.msrb.mxu0 %v1478_v48  ;;  %v1634_v48 = vld [vmem:[%s2980_s8 + $0x140] sm:$0xff] }
0x1395   : > { %v1352_v56 = vadd.f32 %v1351_v51, %v1350_v62  ;;  %v1470_v62 = vld [vmem:[%s2979_s7 + $0x18] sm:$0xff]  ;;  %1660 = vmatpush.msrb.mxu1 %v1609_v13 }
0x1396   : > { %1560 = vmatpush.msrb.mxu0 %v1474_v50  ;;  %v1601_v50 = vld [vmem:[%s2980_s8 + $0x38] sm:$0xff] }
0x1397   : > { %1864 = vmatmul.msk.f32.vlgmr.msra.gmra.mxu2 %vm481_vm10, %v1352_v56  ;;  %v1597_v13 = vld [vmem:[%s2980_s8 + $0x18] sm:$0xff] }
0x1398   : > { %1561 = vmatpush.msrb.mxu0 %v1470_v62  ;;  %v1633_v62 = vld [vmem:[%s2980_s8 + $0x138] sm:$0xff] }
0x141a   : > { %v1374_v17 = vpop.f32.mrf.mxu2 }
0x141b   : > { %v1375_v18 = vadd.f32 %v1374_v17, %v1353_v14  ;;  %v1625_v14 = vld [vmem:[%s2980_s8 + $0xf8] sm:$0xff]  ;;  %v1608_v17 = vld [vmem:[%s2980_s8 + $0x70] sm:$0xff] }
0x141c   : > { %1661 = vmatpush.msrb.mxu1 %v1608_v17  ;;  %v1596_v17 = vld [vmem:[%s2980_s8 + $0x10] sm:$0xff] }
0x141d   : > { %v1865_v53 = vmul.f32 -1.702, %v1375_v18 }
0x141f   : > { %v1379_v54 = vmul.f32 1.442695, %v1865_v53  ;;  %v1656_v53 = vld [vmem:[%s2980_s8 + $0x1f0] sm:$0xff] }
0x1420   : > { %1721 = vmatpush.msrb.mxu3 %v1656_v53  ;;  %v1644_v53 = vld [vmem:[%s2980_s8 + $0x190] sm:$0xff] }
0x1421   : > { %2012 = vpow2.f32 %v1379_v54  ;;  %v1607_v54 = vld [vmem:[%s2980_s8 + $0x68] sm:$0xff] }
0x1422   : > { %1662 = vmatpush.msrb.mxu1 %v1607_v54  ;;  %v1595_v54 = vld [vmem:[%s2980_s8 + $0x8] sm:$0xff] }
0x1427   : > { %v2013_v55 = vpop.eup %2012 }
0x1428   : > { %v1381_v19 = vadd.f32 1.0, %v2013_v55  ;;  %v1623_v55 = vld [vmem:[%s2980_s8 + $0xe8] sm:$0xff] }
0x142a   : > { %2014 = vrcp.f32 %v1381_v19  ;;  %v1393_v22 = vand.u32 2147483648, %v1381_v19  ;;  %v1391_v24 = vand.u32 2147483647, %v1381_v19  ;;  %vm1387_vm14 = vweird.f32 %v1381_v19 }
0x142c   : > { %v1394_v26 = vor.u32 1.1754944e-38, %v1393_v22  ;;  %vm1392_vm0 = vcmp.eq.f32.partialorder %v1391_v24, 8.507059e+37  ;;  %v1638_v22 = vld [vmem:[%s2980_s8 + $0x160] sm:$0xff]  ;;  %v1605_v24 = vld [vmem:[%s2980_s8 + $0x58] sm:$0xff] }
0x1430   : > { %v2015_v44 = vpop.eup %2014 }
0x1431   : > { %v1383_v52 = vmul.f32 %v2015_v44, %v1381_v19  ;;  %vm1388_vm13 = vweird.f32 %v2015_v44  ;;  %v1639_v19 = vld [vmem:[%s2980_s8 + $0x168] sm:$0xff] }
0x1432   : > { %vm1389_vm15 = vmor %vm1387_vm14, %vm1388_vm13 }
0x1433   : > { %v1384_v21 = vsub.f32 1.0, %v1383_v52  ;;  %v1606_v52 = vld [vmem:[%s2980_s8 + $0x60] sm:$0xff] }
0x1434   : > { %1663 = vmatpush.msrb.mxu1 %v1606_v52  ;;  %v1594_v52 = vld [vmem:[%s2980_s8] sm:$0xff] }
0x1435   : > { %v1385_v23 = vmul.f32 %v2015_v44, %v1384_v21  ;;  %v1622_v21 = vld [vmem:[%s2980_s8 + $0xe0] sm:$0xff] }
0x1436   : > { %1664 = vmatpush.msrb.mxu1 %v1605_v24 }
0x1437   : > { %v1386_v25 = vadd.f32 %v2015_v44, %v1385_v23  ;;  %v1654_v23 = vld [vmem:[%s2980_s8 + $0x1e0] sm:$0xff] }
0x1438   : > { %1665 = vmatpush.msrb.mxu1 %v1604_v10 }
0x1439   : > { %v1390_v27 = vsel %vm1389_vm15, %v2015_v44, %v1386_v25  ;;  %v1655_v44 = vld [vmem:[%s2980_s8 + $0x1e8] sm:$0xff]  ;;  %v1621_v25 = vld [vmem:[%s2980_s8 + $0xd8] sm:$0xff] }
0x143a   : > { %v1395_v28 = vsel %vm1392_vm0, %v1394_v26, %v1390_v27  ;;  %1722 = vmatpush.msrb.mxu3 %v1655_v44  ;;  %v1637_v26 = vld [vmem:[%s2980_s8 + $0x158] sm:$0xff]  ;;  %1666 = vmatpush.msrb.mxu1 %v1603_v39  ;;  %v1643_v44 = vld [vmem:[%s2980_s8 + $0x188] sm:$0xff] }
0x143b   : > { %v1397_v29 = vmul.f32 %v1395_v28, %v1375_v18  ;;  %v1624_v18 = vld [vmem:[%s2980_s8 + $0xf0] sm:$0xff]  ;;  %v1653_v27 = vld [vmem:[%s2980_s8 + $0x1d8] sm:$0xff] }
0x143c   : > { %1723 = vmatpush.msrb.mxu3 %v1654_v23  ;;  %v1642_v23 = vld [vmem:[%s2980_s8 + $0x180] sm:$0xff] }
0x143d   : > { %1432 = vmatmul.f32.vlgmr.msra.gmra.mxu3 %v1397_v29 }
0x143e   : > { %1724 = vmatpush.msrb.mxu3 %v1653_v27 }
0x1440   : > { %1725 = vmatpush.msrb.mxu3 %v1652_v38 }
0x1442   : > { %1726 = vmatpush.msrb.mxu3 %v1651_v43 }
0x14c0   : > { %v1433_v31 = vpop.f32.mrf.mxu3 }
0x14c1   : > { %v1434_v5 = vadd.f32 %v1433_v31, %v1415_v30 }
0x14c3   : > { %v1436_v6 = vadd.f32 %v1434_v5, %v2588_v32  ;;  %v1481_v32 = vld [vmem:[%s2979_s7 + $0x70] sm:$0xff] }
0x14c4   : > { %1538 = vmatpush.msrb.mxu2 %v1481_v32 }
0x14c5   : > { %v1438_v9 = vsel %vm1437_vm6, %v1436_v6, 0.0 }
0x14c6   : > { %1439 = vadd.xlane.f32.xlu1 %v1438_v9  ;;  %1539 = vmatpush.msrb.mxu2 %v1477_v37  ;;  %v1636_v37 = vld [vmem:[%s2980_s8 + $0x150] sm:$0xff] }
0x14c8   : > { %1540 = vmatpush.msrb.mxu2 %v1473_v40  ;;  %v1619_v40 = vld [vmem:[%s2980_s8 + $0xc8] sm:$0xff] }
0x14ca   : > { %1541 = vmatpush.msrb.mxu2 %v1469_v45  ;;  %v1602_v45 = vld [vmem:[%s2980_s8 + $0x40] sm:$0xff] }
0x14cb   : > { %1667 = vmatpush.msrb.mxu1 %v1602_v45 }
0x14cc   : > { %1680 = vmatpush.msra.mxu2 %v1625_v14  ;;  %v1613_v14 = vld [vmem:[%s2980_s8 + $0x98] sm:$0xff] }
0x14cd   : > { %1668 = vmatpush.msrb.mxu1 %v1601_v50 }
0x14ce   : > { %1681 = vmatpush.msra.mxu2 %v1624_v18  ;;  %v1612_v18 = vld [vmem:[%s2980_s8 + $0x90] sm:$0xff] }
0x14d0   : > { %1682 = vmatpush.msra.mxu2 %v1623_v55  ;;  %v1611_v55 = vld [vmem:[%s2980_s8 + $0x88] sm:$0xff] }
0x14d2   : > { %1683 = vmatpush.msra.mxu2 %v1622_v21  ;;  %v1610_v21 = vld [vmem:[%s2980_s8 + $0x80] sm:$0xff] }
0x14d4   : > { %1684 = vmatpush.msra.mxu2 %v1621_v25 }
0x14d6   : > { %1685 = vmatpush.msra.mxu2 %v1620_v36 }
0x14d8   : > { %1686 = vmatpush.msra.mxu2 %v1619_v40 }
0x14da   : > { %1687 = vmatpush.msra.mxu2 %v1618_v47 }
0x1539   : > { %v1440_v33 = vpop.xlane.xlu1 %1439 }
0x153a   : > { %v1441_v34 = vmul.f32 %v1440_v33, %v2281_v41 }
0x153c   : > { %v1442_v35 = vsub.f32 %v1436_v6, %v1441_v34 }
0x153e   : > { %v1443_v7 = vmul.f32 %v1442_v35, %v1442_v35 }
0x1540   : > { %v1444_v46 = vsel %vm1437_vm6, %v1443_v7, 0.0 }
0x1541   : > { %1445 = vadd.xlane.f32.xlu2 %v1444_v46 }
0x15b4   : > { %v1446_v49 = vpop.xlane.xlu2 %1445 }
0x15b5   : > { %v1447_v51 = vmul.f32 %v1446_v49, %v2281_v41  ;;  %v2715_v41 = vld [vmem:[%s2978_s6] sm:$0xff] }
0x15b6   : > { %v1461_v1 = vrot.slane %v2715_v41, 2  ;;  %v1464_v4 = vrot.slane %v2715_v41, 3  ;;  %v1650_v49 = vld [vmem:[%s2980_s8 + $0x1c0] sm:$0xff] }
0x15b7   : > { %v1448_v56 = vadd.f32 1e-05, %v1447_v51  ;;  %1727 = vmatpush.msrb.mxu3 %v1650_v49  ;;  %v1617_v51 = vld [vmem:[%s2980_s8 + $0xb8] sm:$0xff] }
0x15b8   : > { %1688 = vmatpush.msra.mxu2 %v1617_v51 }
0x15b9   : > { %2016 = vrsqrt.f32 %v1448_v56  ;;  %vm1455_vm8 = vweird.f32 %v1448_v56 }
0x15bf   : > { %v2017_v57 = vpop.eup %2016 }
0x15c0   : > { %v1450_v58 = vmul.f32 %v2017_v57, %v1448_v56  ;;  %vm1456_vm7 = vweird.f32 %v2017_v57  ;;  %v1649_v56 = vld [vmem:[%s2980_s8 + $0x1b8] sm:$0xff] }
0x15c1   : > { %vm1457_vm9 = vmor %vm1455_vm8, %vm1456_vm7  ;;  %1728 = vmatpush.msrb.mxu3 %v1649_v56 }
0x15c2   : > { %v1451_v59 = vmul.f32 %v2017_v57, %v1450_v58  ;;  %v1616_v58 = vld [vmem:[%s2980_s8 + $0xb0] sm:$0xff] }
0x15c3   : > { %1689 = vmatpush.msra.mxu2 %v1616_v58 }
0x15c4   : > { %v1452_v60 = vmul.f32 0.5, %v1451_v59  ;;  %v1632_v59 = vld [vmem:[%s2980_s8 + $0x130] sm:$0xff] }
0x15c6   : > { %v1453_v61 = vsub.f32 1.5, %v1452_v60  ;;  %v1648_v60 = vld [vmem:[%s2980_s8 + $0x1b0] sm:$0xff] }
0x15c7   : > { %1729 = vmatpush.msrb.mxu3 %v1648_v60 }
0x15c8   : > { %v1454_v63 = vmul.f32 %v2017_v57, %v1453_v61  ;;  %v1599_v61 = vld [vmem:[%s2980_s8 + $0x28] sm:$0xff] }
0x15ca   : > { %v1458_v2 = vsel %vm1457_vm9, %v2017_v57, %v1454_v63  ;;  %v1600_v57 = vld [vmem:[%s2980_s8 + $0x30] sm:$0xff]  ;;  %v1615_v63 = vld [vmem:[%s2980_s8 + $0xa8] sm:$0xff] }
0x15cb   : > { %v1459_v3 = vmul.f32 %v1458_v2, %v1442_v35  ;;  %1669 = vmatpush.msrb.mxu1 %v1600_v57  ;;  %1690 = vmatpush.msra.mxu2 %v1615_v63  ;;  %v1647_v2 = vld [vmem:[%s2980_s8 + $0x1a8] sm:$0xff] }
0x15cc   : > { %1730 = vmatpush.msrb.mxu3 %v1647_v2 }
0x15cd   : > { %v1463_v11 = vmul.f32 %v1461_v1, %v1459_v3  ;;  %v1631_v1 = vld [vmem:[%s2980_s8 + $0x128] sm:$0xff]  ;;  %1670 = vmatpush.msrb.mxu1 %v1599_v61  ;;  %v1598_v3 = vld [vmem:[%s2980_s8 + $0x20] sm:$0xff] }
0x15cf   : > { %v1466_v12 = vadd.f32 %v1464_v4, %v1463_v11  ;;  %v1614_v4 = vld [vmem:[%s2980_s8 + $0xa0] sm:$0xff]  ;;  %1671 = vmatpush.msrb.mxu1 %v1598_v3 }
0x15d0   : > { %v1630_v11 = vld [vmem:[%s2980_s8 + $0x120] sm:$0xff]  ;;  %1691 = vmatpush.msra.mxu2 %v1614_v4 }
0x15d1   : > { %1882 = vmatmul.msk.f32.vlgmr.msra.gmra.mxu0 %vm481_vm10, %v1466_v12  ;;  %1883 = vmatmul.msk.f32.vlgmr.msra.gmra.mxu1 %vm481_vm10, %v1466_v12 }
0x15d2   : > { %1884 = vmatmul.msk.f32.vlgmr.msrb.gmra.mxu2 %vm481_vm10, %v1466_v12  ;;  %1700 = vmatpush.msra.mxu0 %v1641_v15  ;;  %v1629_v15 = vld [vmem:[%s2980_s8 + $0x118] sm:$0xff] }
0x15d3   : > { %1672 = vmatpush.msrb.mxu1 %v1597_v13  ;;  %1692 = vmatpush.msra.mxu2 %v1613_v14 }
0x15d4   : > { %1701 = vmatpush.msra.mxu0 %v1640_v20  ;;  %v1628_v20 = vld [vmem:[%s2980_s8 + $0x110] sm:$0xff] }
0x15d5   : > { %1673 = vmatpush.msrb.mxu1 %v1596_v17  ;;  %1693 = vmatpush.msra.mxu2 %v1612_v18 }
0x15d6   : > { %1702 = vmatpush.msra.mxu0 %v1639_v19  ;;  %v1627_v19 = vld [vmem:[%s2980_s8 + $0x108] sm:$0xff] }
0x15d7   : > { %1674 = vmatpush.msrb.mxu1 %v1595_v54  ;;  %1694 = vmatpush.msra.mxu2 %v1611_v55 }
0x15d8   : > { %1703 = vmatpush.msra.mxu0 %v1638_v22  ;;  %v1626_v22 = vld [vmem:[%s2980_s8 + $0x100] sm:$0xff] }
0x15d9   : > { %1885 = vmatmul.msk.f32.vlgmr.msrb.gmra.mxu0 %vm481_vm10, %v1466_v12  ;;  %v1646_v12 = vld [vmem:[%s2980_s8 + $0x1a0] sm:$0xff]  ;;  %1675 = vmatpush.msrb.mxu1 %v1594_v52 }
0x15da   : > { %1704 = vmatpush.msra.mxu0 %v1637_v26  ;;  %1731 = vmatpush.msrb.mxu3 %v1646_v12 }
0x15db   : > { %1695 = vmatpush.msra.mxu2 %v1610_v21 }
0x15dc   : > { %1705 = vmatpush.msra.mxu0 %v1636_v37  ;;  %1732 = vmatpush.msrb.mxu3 %v1645_v16 }
0x15de   : > { %1706 = vmatpush.msra.mxu0 %v1635_v42  ;;  %1733 = vmatpush.msrb.mxu3 %v1644_v53 }
0x15e0   : > { %1707 = vmatpush.msra.mxu0 %v1634_v48  ;;  %1734 = vmatpush.msrb.mxu3 %v1643_v44 }
0x15e2   : > { %1708 = vmatpush.msra.mxu0 %v1633_v62  ;;  %1735 = vmatpush.msrb.mxu3 %v1642_v23 }
0x15e4   : > { %1709 = vmatpush.msra.mxu0 %v1632_v59 }
0x15e6   : > { %1710 = vmatpush.msra.mxu0 %v1631_v1 }
0x15e8   : > { %1711 = vmatpush.msra.mxu0 %v1630_v11 }
0x15ea   : > { %1712 = vmatpush.msra.mxu0 %v1629_v15 }
0x15ec   : > { %1713 = vmatpush.msra.mxu0 %v1628_v20 }
0x15ee   : > { %1714 = vmatpush.msra.mxu0 %v1627_v19 }
0x15f0   : > { %1715 = vmatpush.msra.mxu0 %v1626_v22 }
0x164e   : > { %v2783_v28 = vpop.f32.mrf.mxu0  ;;  %v2785_v29 = vpop.f32.mrf.mxu1 }
0x164f   : > { %v1566_v30 = vmul.f32 %v2783_v28, %v2783_v28  ;;  %v1567_v31 = vmul.f32 %v2785_v29, %v2785_v29 }
0x1651   : > { %v1570_v5 = vsel %vm407_vm1, %v1566_v30, 0.0  ;;  %v1571_v6 = vsel %vm407_vm1, %v1567_v31, 0.0 }
0x1652   : > { %v1572_v35 = vadd.f32 %v1571_v6, %v1570_v5 }
0x1655   : > { %v2793_v9 = vpop.f32.mrf.mxu2 }
0x1656   : > { %v1568_v33 = vmul.f32 %v2793_v9, %v2793_v9  ;;  %v2797_v34 = vpop.f32.mrf.mxu0 }
0x1657   : > { %v1569_v7 = vmul.f32 %v2797_v34, %v2797_v34 }
0x1658   : > { %v1573_v46 = vsel %vm407_vm1, %v1568_v33, 0.0 }
0x1659   : > { %v1574_v8 = vadd.f32 %v1573_v46, %v1572_v35  ;;  %v1575_v0 = vsel %vm407_vm1, %v1569_v7, 0.0 }
0x165b   : > { %v1576_v32 = vadd.f32 %v1575_v0, %v1574_v8  ;;  %v1658_v0 = vrot.slane %v2715_v41, 4 }
0x165d   : > { %1577 = vadd.xlane.f32.xlu0 %v1576_v32 }
0x16d0   : > { %v1578_v24 = vpop.xlane.xlu0 %1577 }
0x16d1   : > { %v1579_v25 = vadd.f32 1e-12, %v1578_v24 }
0x16d3   : > { %2018 = vrsqrt.f32 %v1579_v25  ;;  %vm1586_vm10 = vweird.f32 %v1579_v25 }
0x16d9   : > { %v2019_v26 = vpop.eup %2018 }
0x16da   : > { %v1581_v27 = vmul.f32 %v2019_v26, %v1579_v25  ;;  %vm1587_vm1 = vweird.f32 %v2019_v26 }
0x16db   : > { %vm1588_vm3 = vmor %vm1586_vm10, %vm1587_vm1 }
0x16dc   : > { %v1582_v30 = vmul.f32 %v2019_v26, %v1581_v27 }
0x16de   : > { %v1583_v31 = vmul.f32 0.5, %v1582_v30 }
0x16e0   : > { %v1584_v5 = vsub.f32 1.5, %v1583_v31 }
0x16e2   : > { %v1585_v6 = vmul.f32 %v2019_v26, %v1584_v5 }
0x16e4   : > { %v1589_v33 = vsel %vm1588_vm3, %v2019_v26, %v1585_v6 }
0x16e5   : > { %v1590_v35 = vmul.f32 %v1589_v33, %v2783_v28  ;;  %v1591_v7 = vmul.f32 %v1589_v33, %v2785_v29  ;;  %v1592_v46 = vmul.f32 %v1589_v33, %v2793_v9  ;;  %v1593_v8 = vmul.f32 %v1589_v33, %v2797_v34 }
0x16e7   : > { %1676 = vmatmul.f32.vlgmr.msrb.gmra.mxu1 %v1590_v35  ;;  %1696 = vmatmul.f32.vlgmr.msra.gmra.mxu2 %v1591_v7 }
0x16e8   : > { %1716 = vmatmul.f32.vlgmr.msra.gmra.mxu0 %v1592_v46  ;;  %1736 = vmatmul.f32.vlgmr.msrb.gmra.mxu3 %v1593_v8 }
0x1764   : > { %v1677_v32 = vpop.f32.mrf.mxu1 }
0x1765   : > { %v1678_v10 = vadd.f32 %v1677_v32, %v1658_v0  ;;  %v1717_v29 = vpop.f32.mrf.mxu0 }
0x176a   : > { %v1697_v28 = vpop.f32.mrf.mxu2 }
0x176b   : > { %v1698_v36 = vadd.f32 %v1697_v28, %v1678_v10  ;;  %v1737_v34 = vpop.f32.mrf.mxu3 }
0x176d   : > { %v1718_v9 = vadd.f32 %v1717_v29, %v1698_v36 }
0x176f   : > { %v1738_v37 = vadd.f32 %v1737_v34, %v1718_v9 }
0x1771   : > { %1741 = vst.msk [vmem:[%s324_s28] sm:$0x1] %vm1740_vm4, %v1738_v37 }
0x1772   : > { %2048 = shalt.err (!%p2045_p3)
}
0x1773   : > { %1889 = dma.vmem_to_hbm [thread:$0]  (%p2189_p5), %s1754_s26, 16, %s1756_s29, %s1743_s14  }
0x1774 PF: > { %p1895_p4 = scmp.ge.s32.totalorder %s2083_s12, 2  ;;  %s1767_s21 = sand.u32 1, %s2071_s30  }
0x1775   : > { %s1768_s18 = scalar_lea.sflag [#allocation3], %s1767_s21 }
0x1776   : > { %p1892_p7 = pnand %p1895_p4, %p2193_p6 }
0x1778   : > { %p1893_p8 = pneg %p1892_p7 }
0x177a   : > { %2066 = dma.done.wait (%p1893_p8), %s1768_s18, 16  }
0x177b   : > { %2068 = vsyncadd (%p1893_p8), %s1768_s18, 4294967280  ;;  %s3010_s22 = sld [smem:[#allocation5_spill]]  ;;  %p19_p9 = scmp.ge.s32.totalorder %s2176_s15, 4  }
0x177c   : > { %s3011_s30 = smov %s2075_s10  ;;  %s3012_s10 = smov %s2079_s11 }
0x177d   : > { %s3014_s12 = smov %s2176_s15  ;;  %21 = sbr.rel (!%p19_p9) target bundleno = 3 (0x3), region = 94 }
0x1781   : > { %s3013_s11 = smov %s3010_s22 }
0x1782   :  { %1773 = vsyncpa [#allocation3], 1 }
0x1783   :  { %1775 = vsyncpa [#allocation3 + $0x1], 1 }

</bundles_post_ra>
